<compile_context>
chip_gen: v7x
topology: tpu7x:2x2x1
jax: 0.10.0
libtpu: 0.0.40
codegen_flags: <defaults>
</compile_context>

<pallas_src>
import functools

import numpy as np
import jax
import jax.numpy as jnp
from jax.experimental import pallas as pl
from jax.experimental.pallas import tpu as pltpu

# Fits v7x (64 MiB / TensorCore) with headroom; safe on v5e / v6e (128 MiB).
_VMEM_LIMIT = 48 * 1024 * 1024


def _compiler_params(dims):
    return pltpu.CompilerParams(dimension_semantics=dims,
                                vmem_limit_bytes=_VMEM_LIMIT)


def _pick_tile(dim, target, align):
    """Largest tile <= target that divides `dim` and is a multiple of `align`;
    otherwise the full dim (full-extent blocks are always (8,128)-legal)."""
    if dim <= target:
        return dim
    t = (target // align) * align
    while t >= align:
        if dim % t == 0:
            return t
        t -= align
    return dim


# ----------------------------------------------------------------------------
# Fused, tiled matmul:  out = epilogue(x @ w + b [+ add])
# ----------------------------------------------------------------------------
def _make_matmul_kernel(activation, has_add):
    def kernel(*refs):
        if has_add:
            x_ref, w_ref, b_ref, add_ref, o_ref, acc_ref = refs
        else:
            x_ref, w_ref, b_ref, o_ref, acc_ref = refs
            add_ref = None
        k = pl.program_id(2)

        @pl.when(k == 0)
        def _init():
            acc_ref[...] = jnp.zeros_like(acc_ref)

        acc_ref[...] += jnp.dot(x_ref[...], w_ref[...],
                                preferred_element_type=jnp.float32)

        @pl.when(k == pl.num_programs(2) - 1)
        def _finalize():
            y = acc_ref[...] + b_ref[...]
            if activation == "gelu":          # gelu_pytorch_tanh
                c = 0.7978845608028654
                y = 0.5 * y * (1.0 + jnp.tanh(c * (y + 0.044715 * y * y * y)))
            if has_add:
                y = y + add_ref[...].astype(jnp.float32)
            o_ref[...] = y.astype(o_ref.dtype)

    return kernel


def fused_matmul(x, w, b, add=None, activation=None, out_dtype=jnp.float32,
                 tm=256, tn=512, tk=512):
    """x:[M,K] @ w:[K,N] + b, optional fused GELU / residual add.
    bf16 MXU operands, f32 accumulation, tiled over (M, N, K)."""
    M, K = x.shape
    _, N = w.shape
    tm = _pick_tile(M, tm, 16)
    tn = _pick_tile(N, tn, 128)
    tk = _pick_tile(K, tk, 128)
    grid = (M // tm, N // tn, K // tk)

    x = x.astype(jnp.bfloat16)
    w = w.astype(jnp.bfloat16)
    b = b.astype(jnp.float32).reshape(1, N)

    in_specs = [
        pl.BlockSpec((tm, tk), lambda i, j, k: (i, k)),
        pl.BlockSpec((tk, tn), lambda i, j, k: (k, j)),
        pl.BlockSpec((1, tn), lambda i, j, k: (0, j)),
    ]
    args = [x, w, b]
    io_aliases = {}
    out_bytes = M * N * (2 if out_dtype == jnp.bfloat16 else 4)
    bytes_accessed = 2 * M * K + 2 * K * N + 4 * N + out_bytes
    if add is not None:
        add = add.astype(out_dtype)
        in_specs.append(pl.BlockSpec((tm, tn), lambda i, j, k: (i, j)))
        args.append(add)
        io_aliases = {3: 0}      # reuse the residual buffer as the output buffer
        bytes_accessed += out_bytes

    cost = pl.CostEstimate(flops=2 * M * N * K,
                           transcendentals=(M * N if activation == "gelu" else 0),
                           bytes_accessed=int(bytes_accessed))

    return pl.pallas_call(
        _make_matmul_kernel(activation, add is not None),
        out_shape=jax.ShapeDtypeStruct((M, N), out_dtype),
        grid=grid,
        in_specs=in_specs,
        out_specs=pl.BlockSpec((tm, tn), lambda i, j, k: (i, j)),
        scratch_shapes=[pltpu.VMEM((tm, tn), jnp.float32)],
        compiler_params=_compiler_params(("parallel", "parallel", "arbitrary")),
        cost_estimate=cost,
        input_output_aliases=io_aliases,
    )(*args)


# ----------------------------------------------------------------------------
# Row-tiled LayerNorm (bf16 output feeds the next matmul directly)
# ----------------------------------------------------------------------------
def _layernorm_kernel(x_ref, g_ref, b_ref, o_ref, *, eps):
    x = x_ref[...].astype(jnp.float32)
    mean = jnp.mean(x, axis=-1, keepdims=True)
    var = jnp.mean(jnp.square(x - mean), axis=-1, keepdims=True)
    y = (x - mean) * jax.lax.rsqrt(var + eps) * g_ref[...] + b_ref[...]
    o_ref[...] = y.astype(o_ref.dtype)


def layernorm(x, g, b, eps=1e-6, out_dtype=jnp.bfloat16, tm=512):
    M, D = x.shape
    tm = _pick_tile(M, tm, 16)
    return pl.pallas_call(
        functools.partial(_layernorm_kernel, eps=eps),
        out_shape=jax.ShapeDtypeStruct((M, D), out_dtype),
        grid=(M // tm,),
        in_specs=[pl.BlockSpec((tm, D), lambda i: (i, 0)),
                  pl.BlockSpec((1, D), lambda i: (0, 0)),
                  pl.BlockSpec((1, D), lambda i: (0, 0))],
        out_specs=pl.BlockSpec((tm, D), lambda i: (i, 0)),
        compiler_params=_compiler_params(("parallel",)),
    )(x, g.reshape(1, D), b.reshape(1, D))


# ----------------------------------------------------------------------------
# Attention: grid over batch, heads split in-kernel from one [P, 3D] tile.
# ----------------------------------------------------------------------------
def _attn_kernel(qkv_ref, o_ref, *, n_heads, head_dim, hidden, scale):
    # qkv_ref: [P, 3*D] (bf16), columns laid out as [q(all heads) | k | v].
    # Static per-head slices -> no HBM head transposes; q is pre-scaled ([P,dh],
    # not the [P,P] scores); softmax denominator uses the EUP approx reciprocal.
    for h in range(n_heads):
        q0 = h * head_dim
        k0 = hidden + h * head_dim
        v0 = 2 * hidden + h * head_dim
        q = (qkv_ref[:, q0:q0 + head_dim].astype(jnp.float32) * scale
             ).astype(jnp.bfloat16)
        k = qkv_ref[:, k0:k0 + head_dim]
        v = qkv_ref[:, v0:v0 + head_dim]
        s = jax.lax.dot_general(q, k, (((1,), (1,)), ((), ())),
                                preferred_element_type=jnp.float32)
        m = jnp.max(s, axis=-1, keepdims=True)
        e = jnp.exp(s - m)
        p = e * pl.reciprocal(jnp.sum(e, axis=-1, keepdims=True), approx=True)
        out_h = jnp.dot(p.astype(jnp.bfloat16), v,
                        preferred_element_type=jnp.float32)
        o_ref[:, q0:q0 + head_dim] = out_h.astype(o_ref.dtype)


def attention(qkv, n_heads, head_dim, hidden, scale):
    # TODO(synk): for much longer token grids, switch to a KV-blocked (flash-style)
    # online-softmax kernel; at SigLIP's P=729 the per-head [P,P] score tile fits VMEM.
    B, P, threeD = qkv.shape
    return pl.pallas_call(
        functools.partial(_attn_kernel, n_heads=n_heads, head_dim=head_dim,
                          hidden=hidden, scale=scale),
        out_shape=jax.ShapeDtypeStruct((B, P, hidden), jnp.bfloat16),
        grid=(B,),
        in_specs=[pl.BlockSpec((None, P, threeD), lambda b: (b, 0, 0))],
        out_specs=pl.BlockSpec((None, P, hidden), lambda b: (b, 0, 0)),
        compiler_params=_compiler_params(("parallel",)),
    )(qkv)


# ----------------------------------------------------------------------------
# Token-space bilinear resize fused with the final L2 normalize
# ----------------------------------------------------------------------------
def _resize_l2norm_kernel(w_ref, x_ref, o_ref):
    y = jnp.dot(w_ref[...], x_ref[...], preferred_element_type=jnp.float32)
    n = jnp.sqrt(jnp.sum(y * y, axis=-1, keepdims=True))
    o_ref[...] = y / jnp.maximum(n, 1e-12)     # F.normalize(p=2, dim=-1)


def resize_l2norm(x, w_tok):
    """x: [B, P, D], w_tok: [T, P] bilinear weights -> normalized [B, T, D]."""
    B, P, D = x.shape
    T = w_tok.shape[0]
    return pl.pallas_call(
        _resize_l2norm_kernel,
        out_shape=jax.ShapeDtypeStruct((B, T, D), jnp.float32),
        grid=(B,),
        in_specs=[pl.BlockSpec((T, P), lambda b: (0, 0)),
                  pl.BlockSpec((None, P, D), lambda b: (b, 0, 0))],
        out_specs=pl.BlockSpec((None, T, D), lambda b: (b, 0, 0)),
        compiler_params=_compiler_params(("parallel",)),
    )(w_tok, x)


def _l2norm_kernel(x_ref, o_ref):
    x = x_ref[...].astype(jnp.float32)
    n = jnp.sqrt(jnp.sum(x * x, axis=-1, keepdims=True))
    o_ref[...] = x / jnp.maximum(n, 1e-12)


def l2_normalize(x, tm=512):
    M, D = x.shape
    tm = _pick_tile(M, tm, 16)
    return pl.pallas_call(
        _l2norm_kernel,
        out_shape=jax.ShapeDtypeStruct((M, D), jnp.float32),
        grid=(M // tm,),
        in_specs=[pl.BlockSpec((tm, D), lambda i: (i, 0))],
        out_specs=pl.BlockSpec((tm, D), lambda i: (i, 0)),
        compiler_params=_compiler_params(("parallel",)),
    )(x)


# ----------------------------------------------------------------------------
# Glue: bilinear-interpolation weight matrix (PyTorch align_corners=False)
# ----------------------------------------------------------------------------
def bilinear_matrix(in_size, out_size):
    W = np.zeros((out_size, in_size), np.float32)
    scale = in_size / out_size
    for o in range(out_size):
        src = (o + 0.5) * scale - 0.5
        src = max(src, 0.0)
        x0 = min(int(np.floor(src)), in_size - 1)
        x1 = min(x0 + 1, in_size - 1)
        lam = src - x0
        W[o, x0] += 1.0 - lam
        W[o, x1] += lam
    return W


# ----------------------------------------------------------------------------
# Parameters (deterministic synthetic init; shapes mirror a small Siglip ViT)
# ----------------------------------------------------------------------------
def init_params(key, cfg, in_channels, image_size):
    D, I, p = cfg["hidden"], cfg["inter"], cfg["patch"]
    P = (image_size // p) ** 2
    keys = jax.random.split(key, 2 + cfg["layers"])

    def nrm(k, shape, s=0.02):
        # matmul weights are stored bf16 (MXU operands); biases / LN params stay f32
        return (s * jax.random.normal(k, shape, jnp.float32)).astype(jnp.bfloat16)

    params = {
        "patch_w": nrm(keys[0], (in_channels * p * p, D)),
        "patch_b": jnp.zeros((D,), jnp.float32),
        "pos_emb": 0.02 * jax.random.normal(keys[1], (P, D), jnp.float32),
        "layers": [],
    }
    for l in range(cfg["layers"]):
        lk = jax.random.split(keys[2 + l], 6)
        params["layers"].append({
            "ln1_g": jnp.ones((D,), jnp.float32),
            "ln1_b": jnp.zeros((D,), jnp.float32),
            # fused [D, 3D] projection: columns = [q | k | v]
            "qkv_w": jnp.concatenate([nrm(lk[0], (D, D)), nrm(lk[1], (D, D)),
                                      nrm(lk[2], (D, D))], axis=1),
            "qkv_b": jnp.zeros((3 * D,), jnp.float32),
            "o_w": nrm(lk[3], (D, D)), "o_b": jnp.zeros((D,), jnp.float32),
            "ln2_g": jnp.ones((D,), jnp.float32),
            "ln2_b": jnp.zeros((D,), jnp.float32),
            "fc1_w": nrm(lk[4], (D, I)), "fc1_b": jnp.zeros((I,), jnp.float32),
            "fc2_w": nrm(lk[5], (I, D)), "fc2_b": jnp.zeros((D,), jnp.float32),
        })
    return params


# ----------------------------------------------------------------------------
# SigLIPEncoder.forward
# ----------------------------------------------------------------------------
def siglip_encoder_forward(params, images, cfg):
    if images.ndim == 3:               # images.dim() == 3 -> unsqueeze(0)
        images = images[None]
    B, C, H, W = images.shape
    p = cfg["patch"]
    hp, wp = H // p, W // p
    P = hp * wp
    D = cfg["hidden"]
    nH = cfg["heads"]
    dh = D // nH
    scale = dh ** -0.5

    # --- patch embedding (strided conv == matmul over patch vectors) -------------
    # TODO(synk): fold the NCHW patchify into the patch-embed DMA via an
    # Element-indexed BlockSpec instead of this one-time XLA transpose.
    xp = (images.reshape(B, C, hp, p, wp, p)
          .transpose(0, 2, 4, 1, 3, 5)
          .reshape(B * P, C * p * p)).astype(jnp.bfloat16)
    pos = jnp.tile(params["pos_emb"], (B, 1))                          # [B*P, D] f32
    x = fused_matmul(xp, params["patch_w"], params["patch_b"], add=pos)  # f32 stream

    # --- transformer encoder layers (hidden_states[-1]: no final post-layernorm) --
    for lp in params["layers"]:
        residual = x
        h = layernorm(x, lp["ln1_g"], lp["ln1_b"])                     # bf16
        qkv = fused_matmul(h, lp["qkv_w"], lp["qkv_b"],
                           out_dtype=jnp.bfloat16)                     # [B*P, 3D]
        a = attention(qkv.reshape(B, P, 3 * D), nH, dh, D, scale)      # [B, P, D]
        x = fused_matmul(a.reshape(B * P, D), lp["o_w"], lp["o_b"],
                         add=residual)                                 # + residual

        residual = x
        h = layernorm(x, lp["ln2_g"], lp["ln2_b"])
        h = fused_matmul(h, lp["fc1_w"], lp["fc1_b"],
                         activation="gelu", out_dtype=jnp.bfloat16)    # bias+GELU
        x = fused_matmul(h, lp["fc2_w"], lp["fc2_b"], add=residual)    # + residual

    feats = x.reshape(B, P, D)        # == outputs.hidden_states[-1]

    # --- bilinear token-grid resize (if num_tokens != 729) fused with L2 norm -----
    num_tokens = cfg["num_tokens"]
    if num_tokens != 729:
        h_side = int(P ** 0.5)
        t_side = int(num_tokens ** 0.5)
        A = bilinear_matrix(h_side, t_side)                 # along H (square grid)
        W_tok = jnp.asarray(np.kron(A, A), jnp.float32)     # [num_tokens, P]
        out = resize_l2norm(feats, W_tok)                   # [B, T, D]
    else:
        out = l2_normalize(feats.reshape(B * P, D)).reshape(B, P, D)
    return out


# ----------------------------------------------------------------------------
if __name__ == "__main__":
    # small config: 16x16 RGB images, patch 4 -> 4x4=16 patches, hidden 32,
    # 4 heads, 2 layers, resize 16 tokens -> num_tokens=4 (2x2), then L2-norm.
    cfg = dict(patch=4, hidden=32, heads=4, inter=64, layers=2, num_tokens=4)

    key = jax.random.PRNGKey(0)
    kp, kx = jax.random.split(key)
    params = init_params(kp, cfg, in_channels=3, image_size=16)
    images = jax.random.normal(kx, (2, 3, 16, 16), jnp.float32)   # NCHW

    fwd = jax.jit(lambda prm, img: siglip_encoder_forward(prm, img, cfg))
    out = jax.block_until_ready(fwd(params, images))

    assert out.shape == (2, cfg["num_tokens"], cfg["hidden"]), out.shape
    assert bool(jnp.all(jnp.isfinite(out)))
    # rows are unit-norm after F.normalize
    norms = jnp.linalg.norm(out, axis=-1)
    assert bool(jnp.allclose(norms, 1.0, atol=1e-5))
    print("KERNEL_OK")
</pallas_src>

<mosaic_0001>
module attributes {stable_mosaic.version = 11 : i64} {
  func.func @_layernorm_kernel(%arg0: i32, %arg1: memref<32x32xf32, #tpu.memory_space<vmem>>, %arg2: memref<1x32xf32, #tpu.memory_space<vmem>>, %arg3: memref<1x32xf32, #tpu.memory_space<vmem>>, %arg4: memref<32x32xbf16, #tpu.memory_space<vmem>>) attributes {dimension_semantics = [#tpu.dimension_semantics<parallel>], iteration_bounds = array<i64: 1>, scalar_prefetch = 0 : i64, scratch_operands = 0 : i64, tpu.core_type = #tpu.core_type<tc>, window_params = [{transform_indices = @transform_0, window_bounds = array<i64: 32, 32>}, {pipeline_mode = #tpu.pipeline_mode<synchronous>, transform_indices = @transform_1, window_bounds = array<i64: 1, 32>}, {pipeline_mode = #tpu.pipeline_mode<synchronous>, transform_indices = @transform_2, window_bounds = array<i64: 1, 32>}, {transform_indices = @transform_3, window_bounds = array<i64: 32, 32>}]} {
    %c0 = arith.constant 0 : index
    %c0_0 = arith.constant 0 : index
    %0 = vector.load %arg1[%c0, %c0_0] : memref<32x32xf32, #tpu.memory_space<vmem>>, vector<32x32xf32>
    %cst = arith.constant dense<0.000000e+00> : vector<32xf32>
    %1 = vector.multi_reduction <add>, %0, %cst [1] : vector<32x32xf32> to vector<32xf32>
    %2 = vector.shape_cast %1 : vector<32xf32> to vector<32x1xf32>
    %cst_1 = arith.constant 3.200000e+01 : f32
    %3 = vector.broadcast %cst_1 : f32 to vector<32x1xf32>
    %4 = arith.divf %2, %3 : vector<32x1xf32>
    %5 = vector.broadcast %4 : vector<32x1xf32> to vector<32x32xf32>
    %6 = arith.subf %0, %5 : vector<32x32xf32>
    %7 = arith.mulf %6, %6 : vector<32x32xf32>
    %cst_2 = arith.constant dense<0.000000e+00> : vector<32xf32>
    %8 = vector.multi_reduction <add>, %7, %cst_2 [1] : vector<32x32xf32> to vector<32xf32>
    %9 = vector.shape_cast %8 : vector<32xf32> to vector<32x1xf32>
    %cst_3 = arith.constant 3.200000e+01 : f32
    %10 = vector.broadcast %cst_3 : f32 to vector<32x1xf32>
    %11 = arith.divf %9, %10 : vector<32x1xf32>
    %12 = vector.broadcast %4 : vector<32x1xf32> to vector<32x32xf32>
    %13 = arith.subf %0, %12 : vector<32x32xf32>
    %cst_4 = arith.constant 9.99999997E-7 : f32
    %14 = vector.broadcast %cst_4 : f32 to vector<32x1xf32>
    %15 = arith.addf %11, %14 : vector<32x1xf32>
    %16 = math.rsqrt %15 : vector<32x1xf32>
    %17 = vector.broadcast %16 : vector<32x1xf32> to vector<32x32xf32>
    %18 = arith.mulf %13, %17 : vector<32x32xf32>
    %c0_5 = arith.constant 0 : index
    %c0_6 = arith.constant 0 : index
    %19 = vector.load %arg2[%c0_5, %c0_6] : memref<1x32xf32, #tpu.memory_space<vmem>>, vector<1x32xf32>
    %20 = vector.broadcast %19 : vector<1x32xf32> to vector<32x32xf32>
    %21 = arith.mulf %18, %20 : vector<32x32xf32>
    %c0_7 = arith.constant 0 : index
    %c0_8 = arith.constant 0 : index
    %22 = vector.load %arg3[%c0_7, %c0_8] : memref<1x32xf32, #tpu.memory_space<vmem>>, vector<1x32xf32>
    %23 = vector.broadcast %22 : vector<1x32xf32> to vector<32x32xf32>
    %24 = arith.addf %21, %23 : vector<32x32xf32>
    %25 = arith.truncf %24 : vector<32x32xf32> to vector<32x32xbf16>
    %c0_9 = arith.constant 0 : index
    %c0_10 = arith.constant 0 : index
    %26 = vector.load %arg4[%c0_9, %c0_10] : memref<32x32xbf16, #tpu.memory_space<vmem>>, vector<32x32xbf16>
    tpu.vector_store %arg4[%c0_9, %c0_10], %25 {strides = array<i32>} : memref<32x32xbf16, #tpu.memory_space<vmem>>, vector<32x32xbf16>,
    return
  }
  func.func @transform_0(%arg0: i32) -> (i32, i32) {
    %c0_i32 = arith.constant 0 : i32
    %c0_i32_0 = arith.constant 0 : i32
    return %arg0, %c0_i32 : i32, i32
  }
  func.func @transform_1(%arg0: i32) -> (i32, i32) {
    %c0_i32 = arith.constant 0 : i32
    %c0_i32_0 = arith.constant 0 : i32
    %c0_i32_1 = arith.constant 0 : i32
    return %c0_i32, %c0_i32_0 : i32, i32
  }
  func.func @transform_2(%arg0: i32) -> (i32, i32) {
    %c0_i32 = arith.constant 0 : i32
    %c0_i32_0 = arith.constant 0 : i32
    %c0_i32_1 = arith.constant 0 : i32
    return %c0_i32, %c0_i32_0 : i32, i32
  }
  func.func @transform_3(%arg0: i32) -> (i32, i32) {
    %c0_i32 = arith.constant 0 : i32
    %c0_i32_0 = arith.constant 0 : i32
    return %arg0, %c0_i32 : i32, i32
  }
}

module attributes {stable_mosaic.version = 11 : i64} {
  func.func @kernel(%arg0: i32, %arg1: i32, %arg2: i32, %arg3: memref<32x48xbf16, #tpu.memory_space<vmem>>, %arg4: memref<48x32xbf16, #tpu.memory_space<vmem>>, %arg5: memref<1x32xf32, #tpu.memory_space<vmem>>, %arg6: memref<32x32xf32, #tpu.memory_space<vmem>>, %arg7: memref<32x32xf32, #tpu.memory_space<vmem>>, %arg8: memref<32x32xf32, #tpu.memory_space<vmem>>) attributes {dimension_semantics = [#tpu.dimension_semantics<parallel>, #tpu.dimension_semantics<parallel>, #tpu.dimension_semantics<arbitrary>], iteration_bounds = array<i64: 1, 1, 1>, scalar_prefetch = 0 : i64, scratch_operands = 1 : i64, tpu.core_type = #tpu.core_type<tc>, window_params = [{transform_indices = @transform_0, window_bounds = array<i64: 32, 48>}, {transform_indices = @transform_1, window_bounds = array<i64: 48, 32>}, {transform_indices = @transform_2, window_bounds = array<i64: 1, 32>}, {transform_indices = @transform_3, window_bounds = array<i64: 32, 32>}, {transform_indices = @transform_4, window_bounds = array<i64: 32, 32>}]} {
    %c0_i32 = arith.constant 0 : i32
    %0 = arith.cmpi eq, %arg2, %c0_i32 : i32
    %1 = arith.extui %0 : i1 to i32
    %c0_i32_0 = arith.constant 0 : i32
    %2 = arith.cmpi ne, %1, %c0_i32_0 : i32
    scf.if %2 {
      %cst_10 = arith.constant 0.000000e+00 : f32
      %12 = vector.broadcast %cst_10 : f32 to vector<32x32xf32>
      %c0_11 = arith.constant 0 : index
      %c0_12 = arith.constant 0 : index
      %13 = vector.load %arg8[%c0_11, %c0_12] : memref<32x32xf32, #tpu.memory_space<vmem>>, vector<32x32xf32>
      tpu.vector_store %arg8[%c0_11, %c0_12], %12 {strides = array<i32>} : memref<32x32xf32, #tpu.memory_space<vmem>>, vector<32x32xf32>,
    } else {
    }
    %c0 = arith.constant 0 : index
    %c0_1 = arith.constant 0 : index
    %3 = vector.load %arg8[%c0, %c0_1] : memref<32x32xf32, #tpu.memory_space<vmem>>, vector<32x32xf32>
    %c0_2 = arith.constant 0 : index
    %c0_3 = arith.constant 0 : index
    %4 = vector.load %arg3[%c0_2, %c0_3] : memref<32x48xbf16, #tpu.memory_space<vmem>>, vector<32x48xbf16>
    %c0_4 = arith.constant 0 : index
    %c0_5 = arith.constant 0 : index
    %5 = vector.load %arg4[%c0_4, %c0_5] : memref<48x32xbf16, #tpu.memory_space<vmem>>, vector<48x32xbf16>
    %cst = arith.constant dense<0.000000e+00> : vector<32x32xf32>
    %6 = tpu.matmul %4, %5, %cst {dimension_numbers = #tpu.dot_dimension_numbers<[1], [0], [0], [1], [0, 0, 1, 1], [], []>} : vector<32x48xbf16>, vector<48x32xbf16>, vector<32x32xf32> -> vector<32x32xf32>
    %7 = arith.addf %3, %6 : vector<32x32xf32>
    %c0_6 = arith.constant 0 : index
    %c0_7 = arith.constant 0 : index
    %8 = vector.load %arg8[%c0_6, %c0_7] : memref<32x32xf32, #tpu.memory_space<vmem>>, vector<32x32xf32>
    tpu.vector_store %arg8[%c0_6, %c0_7], %7 {strides = array<i32>} : memref<32x32xf32, #tpu.memory_space<vmem>>, vector<32x32xf32>,
    %c0_i32_8 = arith.constant 0 : i32
    %9 = arith.cmpi eq, %arg2, %c0_i32_8 : i32
    %10 = arith.extui %9 : i1 to i32
    %c0_i32_9 = arith.constant 0 : i32
    %11 = arith.cmpi ne, %10, %c0_i32_9 : i32
    scf.if %11 {
      %c0_10 = arith.constant 0 : index
      %c0_11 = arith.constant 0 : index
      %12 = vector.load %arg8[%c0_10, %c0_11] : memref<32x32xf32, #tpu.memory_space<vmem>>, vector<32x32xf32>
      %c0_12 = arith.constant 0 : index
      %c0_13 = arith.constant 0 : index
      %13 = vector.load %arg5[%c0_12, %c0_13] : memref<1x32xf32, #tpu.memory_space<vmem>>, vector<1x32xf32>
      %14 = vector.broadcast %13 : vector<1x32xf32> to vector<32x32xf32>
      %15 = arith.addf %12, %14 : vector<32x32xf32>
      %c0_14 = arith.constant 0 : index
      %c0_15 = arith.constant 0 : index
      %16 = vector.load %arg6[%c0_14, %c0_15] : memref<32x32xf32, #tpu.memory_space<vmem>>, vector<32x32xf32>
      %17 = arith.addf %15, %16 : vector<32x32xf32>
      %c0_16 = arith.constant 0 : index
      %c0_17 = arith.constant 0 : index
      %18 = vector.load %arg7[%c0_16, %c0_17] : memref<32x32xf32, #tpu.memory_space<vmem>>, vector<32x32xf32>
      tpu.vector_store %arg7[%c0_16, %c0_17], %17 {strides = array<i32>} : memref<32x32xf32, #tpu.memory_space<vmem>>, vector<32x32xf32>,
    } else {
    }
    return
  }
  func.func @transform_0(%arg0: i32, %arg1: i32, %arg2: i32) -> (i32, i32) {
    %c0_i32 = arith.constant 0 : i32
    return %arg0, %arg2 : i32, i32
  }
  func.func @transform_1(%arg0: i32, %arg1: i32, %arg2: i32) -> (i32, i32) {
    %c0_i32 = arith.constant 0 : i32
    return %arg2, %arg1 : i32, i32
  }
  func.func @transform_2(%arg0: i32, %arg1: i32, %arg2: i32) -> (i32, i32) {
    %c0_i32 = arith.constant 0 : i32
    %c0_i32_0 = arith.constant 0 : i32
    return %c0_i32, %arg1 : i32, i32
  }
  func.func @transform_3(%arg0: i32, %arg1: i32, %arg2: i32) -> (i32, i32) {
    %c0_i32 = arith.constant 0 : i32
    return %arg0, %arg1 : i32, i32
  }
  func.func @transform_4(%arg0: i32, %arg1: i32, %arg2: i32) -> (i32, i32) {
    %c0_i32 = arith.constant 0 : i32
    return %arg0, %arg1 : i32, i32
  }
}

module attributes {stable_mosaic.version = 11 : i64} {
  func.func @kernel(%arg0: i32, %arg1: i32, %arg2: i32, %arg3: memref<32x32xbf16, #tpu.memory_space<vmem>>, %arg4: memref<32x96xbf16, #tpu.memory_space<vmem>>, %arg5: memref<1x96xf32, #tpu.memory_space<vmem>>, %arg6: memref<32x96xbf16, #tpu.memory_space<vmem>>, %arg7: memref<32x96xf32, #tpu.memory_space<vmem>>) attributes {dimension_semantics = [#tpu.dimension_semantics<parallel>, #tpu.dimension_semantics<parallel>, #tpu.dimension_semantics<arbitrary>], iteration_bounds = array<i64: 1, 1, 1>, scalar_prefetch = 0 : i64, scratch_operands = 1 : i64, tpu.core_type = #tpu.core_type<tc>, window_params = [{transform_indices = @transform_0, window_bounds = array<i64: 32, 32>}, {transform_indices = @transform_1, window_bounds = array<i64: 32, 96>}, {transform_indices = @transform_2, window_bounds = array<i64: 1, 96>}, {transform_indices = @transform_3, window_bounds = array<i64: 32, 96>}]} {
    %c0_i32 = arith.constant 0 : i32
    %0 = arith.cmpi eq, %arg2, %c0_i32 : i32
    %1 = arith.extui %0 : i1 to i32
    %c0_i32_0 = arith.constant 0 : i32
    %2 = arith.cmpi ne, %1, %c0_i32_0 : i32
    scf.if %2 {
      %cst_10 = arith.constant 0.000000e+00 : f32
      %12 = vector.broadcast %cst_10 : f32 to vector<32x96xf32>
      %c0_11 = arith.constant 0 : index
      %c0_12 = arith.constant 0 : index
      %13 = vector.load %arg7[%c0_11, %c0_12] : memref<32x96xf32, #tpu.memory_space<vmem>>, vector<32x96xf32>
      tpu.vector_store %arg7[%c0_11, %c0_12], %12 {strides = array<i32>} : memref<32x96xf32, #tpu.memory_space<vmem>>, vector<32x96xf32>,
    } else {
    }
    %c0 = arith.constant 0 : index
    %c0_1 = arith.constant 0 : index
    %3 = vector.load %arg7[%c0, %c0_1] : memref<32x96xf32, #tpu.memory_space<vmem>>, vector<32x96xf32>
    %c0_2 = arith.constant 0 : index
    %c0_3 = arith.constant 0 : index
    %4 = vector.load %arg3[%c0_2, %c0_3] : memref<32x32xbf16, #tpu.memory_space<vmem>>, vector<32x32xbf16>
    %c0_4 = arith.constant 0 : index
    %c0_5 = arith.constant 0 : index
    %5 = vector.load %arg4[%c0_4, %c0_5] : memref<32x96xbf16, #tpu.memory_space<vmem>>, vector<32x96xbf16>
    %cst = arith.constant dense<0.000000e+00> : vector<32x96xf32>
    %6 = tpu.matmul %4, %5, %cst {dimension_numbers = #tpu.dot_dimension_numbers<[1], [0], [0], [1], [0, 0, 1, 1], [], []>} : vector<32x32xbf16>, vector<32x96xbf16>, vector<32x96xf32> -> vector<32x96xf32>
    %7 = arith.addf %3, %6 : vector<32x96xf32>
    %c0_6 = arith.constant 0 : index
    %c0_7 = arith.constant 0 : index
    %8 = vector.load %arg7[%c0_6, %c0_7] : memref<32x96xf32, #tpu.memory_space<vmem>>, vector<32x96xf32>
    tpu.vector_store %arg7[%c0_6, %c0_7], %7 {strides = array<i32>} : memref<32x96xf32, #tpu.memory_space<vmem>>, vector<32x96xf32>,
    %c0_i32_8 = arith.constant 0 : i32
    %9 = arith.cmpi eq, %arg2, %c0_i32_8 : i32
    %10 = arith.extui %9 : i1 to i32
    %c0_i32_9 = arith.constant 0 : i32
    %11 = arith.cmpi ne, %10, %c0_i32_9 : i32
    scf.if %11 {
      %c0_10 = arith.constant 0 : index
      %c0_11 = arith.constant 0 : index
      %12 = vector.load %arg7[%c0_10, %c0_11] : memref<32x96xf32, #tpu.memory_space<vmem>>, vector<32x96xf32>
      %c0_12 = arith.constant 0 : index
      %c0_13 = arith.constant 0 : index
      %13 = vector.load %arg5[%c0_12, %c0_13] : memref<1x96xf32, #tpu.memory_space<vmem>>, vector<1x96xf32>
      %14 = vector.broadcast %13 : vector<1x96xf32> to vector<32x96xf32>
      %15 = arith.addf %12, %14 : vector<32x96xf32>
      %16 = arith.truncf %15 : vector<32x96xf32> to vector<32x96xbf16>
      %c0_14 = arith.constant 0 : index
      %c0_15 = arith.constant 0 : index
      %17 = vector.load %arg6[%c0_14, %c0_15] : memref<32x96xbf16, #tpu.memory_space<vmem>>, vector<32x96xbf16>
      tpu.vector_store %arg6[%c0_14, %c0_15], %16 {strides = array<i32>} : memref<32x96xbf16, #tpu.memory_space<vmem>>, vector<32x96xbf16>,
    } else {
    }
    return
  }
  func.func @transform_0(%arg0: i32, %arg1: i32, %arg2: i32) -> (i32, i32) {
    %c0_i32 = arith.constant 0 : i32
    return %arg0, %arg2 : i32, i32
  }
  func.func @transform_1(%arg0: i32, %arg1: i32, %arg2: i32) -> (i32, i32) {
    %c0_i32 = arith.constant 0 : i32
    return %arg2, %arg1 : i32, i32
  }
  func.func @transform_2(%arg0: i32, %arg1: i32, %arg2: i32) -> (i32, i32) {
    %c0_i32 = arith.constant 0 : i32
    %c0_i32_0 = arith.constant 0 : i32
    return %c0_i32, %arg1 : i32, i32
  }
  func.func @transform_3(%arg0: i32, %arg1: i32, %arg2: i32) -> (i32, i32) {
    %c0_i32 = arith.constant 0 : i32
    return %arg0, %arg1 : i32, i32
  }
}

module attributes {stable_mosaic.version = 11 : i64} {
  func.func @_attn_kernel(%arg0: i32, %arg1: memref<1x16x96xbf16, #tpu.memory_space<vmem>>, %arg2: memref<1x16x32xbf16, #tpu.memory_space<vmem>>) attributes {dimension_semantics = [#tpu.dimension_semantics<parallel>], iteration_bounds = array<i64: 2>, scalar_prefetch = 0 : i64, scratch_operands = 0 : i64, tpu.core_type = #tpu.core_type<tc>, window_params = [{transform_indices = @transform_0, window_bounds = array<i64: 1, 16, 96>}, {transform_indices = @transform_1, window_bounds = array<i64: 1, 16, 32>}]} {
    %c0 = arith.constant 0 : index
    %c0_0 = arith.constant 0 : index
    %c0_1 = arith.constant 0 : index
    %0 = vector.load %arg1[%c0, %c0_0, %c0_1] : memref<1x16x96xbf16, #tpu.memory_space<vmem>>, vector<1x16x8xbf16>
    %1 = vector.shape_cast %0 : vector<1x16x8xbf16> to vector<16x8xbf16>
    %2 = arith.extf %1 : vector<16x8xbf16> to vector<16x8xf32>
    %cst = arith.constant 0.353553385 : f32
    %3 = vector.broadcast %cst : f32 to vector<16x8xf32>
    %4 = arith.mulf %2, %3 : vector<16x8xf32>
    %5 = arith.truncf %4 : vector<16x8xf32> to vector<16x8xbf16>
    %c0_2 = arith.constant 0 : index
    %c0_3 = arith.constant 0 : index
    %c32 = arith.constant 32 : index
    %6 = vector.load %arg1[%c0_2, %c0_3, %c32] : memref<1x16x96xbf16, #tpu.memory_space<vmem>>, vector<1x16x8xbf16>
    %7 = vector.shape_cast %6 : vector<1x16x8xbf16> to vector<16x8xbf16>
    %c0_4 = arith.constant 0 : index
    %c0_5 = arith.constant 0 : index
    %c64 = arith.constant 64 : index
    %8 = vector.load %arg1[%c0_4, %c0_5, %c64] : memref<1x16x96xbf16, #tpu.memory_space<vmem>>, vector<1x16x8xbf16>
    %9 = vector.shape_cast %8 : vector<1x16x8xbf16> to vector<16x8xbf16>
    %cst_6 = arith.constant dense<0.000000e+00> : vector<16x16xf32>
    %10 = tpu.matmul %5, %7, %cst_6 {dimension_numbers = #tpu.dot_dimension_numbers<[1], [1], [0], [0], [0, 0, 1, 0], [], []>} : vector<16x8xbf16>, vector<16x8xbf16>, vector<16x16xf32> -> vector<16x16xf32>
    %cst_7 = arith.constant dense<0xFF800000> : vector<16xf32>
    %11 = vector.multi_reduction <maximumf>, %10, %cst_7 [1] : vector<16x16xf32> to vector<16xf32>
    %12 = vector.shape_cast %11 : vector<16xf32> to vector<16x1xf32>
    %13 = vector.broadcast %12 : vector<16x1xf32> to vector<16x16xf32>
    %14 = arith.subf %10, %13 : vector<16x16xf32>
    %15 = math.exp %14 : vector<16x16xf32>
    %cst_8 = arith.constant dense<0.000000e+00> : vector<16xf32>
    %16 = vector.multi_reduction <add>, %15, %cst_8 [1] : vector<16x16xf32> to vector<16xf32>
    %17 = vector.shape_cast %16 : vector<16xf32> to vector<16x1xf32>
    %18 = tpu.reciprocal %17 {approx = true} : vector<16x1xf32> -> vector<16x1xf32>
    %19 = vector.broadcast %18 : vector<16x1xf32> to vector<16x16xf32>
    %20 = arith.mulf %15, %19 : vector<16x16xf32>
    %21 = arith.truncf %20 : vector<16x16xf32> to vector<16x16xbf16>
    %cst_9 = arith.constant dense<0.000000e+00> : vector<16x8xf32>
    %22 = tpu.matmul %21, %9, %cst_9 {dimension_numbers = #tpu.dot_dimension_numbers<[1], [0], [0], [1], [0, 0, 1, 1], [], []>} : vector<16x16xbf16>, vector<16x8xbf16>, vector<16x8xf32> -> vector<16x8xf32>
    %23 = arith.truncf %22 : vector<16x8xf32> to vector<16x8xbf16>
    %c0_10 = arith.constant 0 : index
    %c0_11 = arith.constant 0 : index
    %c0_12 = arith.constant 0 : index
    %24 = vector.load %arg2[%c0_10, %c0_11, %c0_12] : memref<1x16x32xbf16, #tpu.memory_space<vmem>>, vector<1x16x8xbf16>
    %25 = vector.shape_cast %24 : vector<1x16x8xbf16> to vector<16x8xbf16>
    %26 = vector.shape_cast %23 : vector<16x8xbf16> to vector<1x16x8xbf16>
    tpu.vector_store %arg2[%c0_10, %c0_11, %c0_12], %26 {strides = array<i32>} : memref<1x16x32xbf16, #tpu.memory_space<vmem>>, vector<1x16x8xbf16>,
    %c0_13 = arith.constant 0 : index
    %c0_14 = arith.constant 0 : index
    %c8 = arith.constant 8 : index
    %27 = vector.load %arg1[%c0_13, %c0_14, %c8] : memref<1x16x96xbf16, #tpu.memory_space<vmem>>, vector<1x16x8xbf16>
    %28 = vector.shape_cast %27 : vector<1x16x8xbf16> to vector<16x8xbf16>
    %29 = arith.extf %28 : vector<16x8xbf16> to vector<16x8xf32>
    %cst_15 = arith.constant 0.353553385 : f32
    %30 = vector.broadcast %cst_15 : f32 to vector<16x8xf32>
    %31 = arith.mulf %29, %30 : vector<16x8xf32>
    %32 = arith.truncf %31 : vector<16x8xf32> to vector<16x8xbf16>
    %c0_16 = arith.constant 0 : index
    %c0_17 = arith.constant 0 : index
    %c40 = arith.constant 40 : index
    %33 = vector.load %arg1[%c0_16, %c0_17, %c40] : memref<1x16x96xbf16, #tpu.memory_space<vmem>>, vector<1x16x8xbf16>
    %34 = vector.shape_cast %33 : vector<1x16x8xbf16> to vector<16x8xbf16>
    %c0_18 = arith.constant 0 : index
    %c0_19 = arith.constant 0 : index
    %c72 = arith.constant 72 : index
    %35 = vector.load %arg1[%c0_18, %c0_19, %c72] : memref<1x16x96xbf16, #tpu.memory_space<vmem>>, vector<1x16x8xbf16>
    %36 = vector.shape_cast %35 : vector<1x16x8xbf16> to vector<16x8xbf16>
    %cst_20 = arith.constant dense<0.000000e+00> : vector<16x16xf32>
    %37 = tpu.matmul %32, %34, %cst_20 {dimension_numbers = #tpu.dot_dimension_numbers<[1], [1], [0], [0], [0, 0, 1, 0], [], []>} : vector<16x8xbf16>, vector<16x8xbf16>, vector<16x16xf32> -> vector<16x16xf32>
    %cst_21 = arith.constant dense<0xFF800000> : vector<16xf32>
    %38 = vector.multi_reduction <maximumf>, %37, %cst_21 [1] : vector<16x16xf32> to vector<16xf32>
    %39 = vector.shape_cast %38 : vector<16xf32> to vector<16x1xf32>
    %40 = vector.broadcast %39 : vector<16x1xf32> to vector<16x16xf32>
    %41 = arith.subf %37, %40 : vector<16x16xf32>
    %42 = math.exp %41 : vector<16x16xf32>
    %cst_22 = arith.constant dense<0.000000e+00> : vector<16xf32>
    %43 = vector.multi_reduction <add>, %42, %cst_22 [1] : vector<16x16xf32> to vector<16xf32>
    %44 = vector.shape_cast %43 : vector<16xf32> to vector<16x1xf32>
    %45 = tpu.reciprocal %44 {approx = true} : vector<16x1xf32> -> vector<16x1xf32>
    %46 = vector.broadcast %45 : vector<16x1xf32> to vector<16x16xf32>
    %47 = arith.mulf %42, %46 : vector<16x16xf32>
    %48 = arith.truncf %47 : vector<16x16xf32> to vector<16x16xbf16>
    %cst_23 = arith.constant dense<0.000000e+00> : vector<16x8xf32>
    %49 = tpu.matmul %48, %36, %cst_23 {dimension_numbers = #tpu.dot_dimension_numbers<[1], [0], [0], [1], [0, 0, 1, 1], [], []>} : vector<16x16xbf16>, vector<16x8xbf16>, vector<16x8xf32> -> vector<16x8xf32>
    %50 = arith.truncf %49 : vector<16x8xf32> to vector<16x8xbf16>
    %c0_24 = arith.constant 0 : index
    %c0_25 = arith.constant 0 : index
    %c8_26 = arith.constant 8 : index
    %51 = vector.load %arg2[%c0_24, %c0_25, %c8_26] : memref<1x16x32xbf16, #tpu.memory_space<vmem>>, vector<1x16x8xbf16>
    %52 = vector.shape_cast %51 : vector<1x16x8xbf16> to vector<16x8xbf16>
    %53 = vector.shape_cast %50 : vector<16x8xbf16> to vector<1x16x8xbf16>
    tpu.vector_store %arg2[%c0_24, %c0_25, %c8_26], %53 {strides = array<i32>} : memref<1x16x32xbf16, #tpu.memory_space<vmem>>, vector<1x16x8xbf16>,
    %c0_27 = arith.constant 0 : index
    %c0_28 = arith.constant 0 : index
    %c16 = arith.constant 16 : index
    %54 = vector.load %arg1[%c0_27, %c0_28, %c16] : memref<1x16x96xbf16, #tpu.memory_space<vmem>>, vector<1x16x8xbf16>
    %55 = vector.shape_cast %54 : vector<1x16x8xbf16> to vector<16x8xbf16>
    %56 = arith.extf %55 : vector<16x8xbf16> to vector<16x8xf32>
    %cst_29 = arith.constant 0.353553385 : f32
    %57 = vector.broadcast %cst_29 : f32 to vector<16x8xf32>
    %58 = arith.mulf %56, %57 : vector<16x8xf32>
    %59 = arith.truncf %58 : vector<16x8xf32> to vector<16x8xbf16>
    %c0_30 = arith.constant 0 : index
    %c0_31 = arith.constant 0 : index
    %c48 = arith.constant 48 : index
    %60 = vector.load %arg1[%c0_30, %c0_31, %c48] : memref<1x16x96xbf16, #tpu.memory_space<vmem>>, vector<1x16x8xbf16>
    %61 = vector.shape_cast %60 : vector<1x16x8xbf16> to vector<16x8xbf16>
    %c0_32 = arith.constant 0 : index
    %c0_33 = arith.constant 0 : index
    %c80 = arith.constant 80 : index
    %62 = vector.load %arg1[%c0_32, %c0_33, %c80] : memref<1x16x96xbf16, #tpu.memory_space<vmem>>, vector<1x16x8xbf16>
    %63 = vector.shape_cast %62 : vector<1x16x8xbf16> to vector<16x8xbf16>
    %cst_34 = arith.constant dense<0.000000e+00> : vector<16x16xf32>
    %64 = tpu.matmul %59, %61, %cst_34 {dimension_numbers = #tpu.dot_dimension_numbers<[1], [1], [0], [0], [0, 0, 1, 0], [], []>} : vector<16x8xbf16>, vector<16x8xbf16>, vector<16x16xf32> -> vector<16x16xf32>
    %cst_35 = arith.constant dense<0xFF800000> : vector<16xf32>
    %65 = vector.multi_reduction <maximumf>, %64, %cst_35 [1] : vector<16x16xf32> to vector<16xf32>
    %66 = vector.shape_cast %65 : vector<16xf32> to vector<16x1xf32>
    %67 = vector.broadcast %66 : vector<16x1xf32> to vector<16x16xf32>
    %68 = arith.subf %64, %67 : vector<16x16xf32>
    %69 = math.exp %68 : vector<16x16xf32>
    %cst_36 = arith.constant dense<0.000000e+00> : vector<16xf32>
    %70 = vector.multi_reduction <add>, %69, %cst_36 [1] : vector<16x16xf32> to vector<16xf32>
    %71 = vector.shape_cast %70 : vector<16xf32> to vector<16x1xf32>
    %72 = tpu.reciprocal %71 {approx = true} : vector<16x1xf32> -> vector<16x1xf32>
    %73 = vector.broadcast %72 : vector<16x1xf32> to vector<16x16xf32>
    %74 = arith.mulf %69, %73 : vector<16x16xf32>
    %75 = arith.truncf %74 : vector<16x16xf32> to vector<16x16xbf16>
    %cst_37 = arith.constant dense<0.000000e+00> : vector<16x8xf32>
    %76 = tpu.matmul %75, %63, %cst_37 {dimension_numbers = #tpu.dot_dimension_numbers<[1], [0], [0], [1], [0, 0, 1, 1], [], []>} : vector<16x16xbf16>, vector<16x8xbf16>, vector<16x8xf32> -> vector<16x8xf32>
    %77 = arith.truncf %76 : vector<16x8xf32> to vector<16x8xbf16>
    %c0_38 = arith.constant 0 : index
    %c0_39 = arith.constant 0 : index
    %c16_40 = arith.constant 16 : index
    %78 = vector.load %arg2[%c0_38, %c0_39, %c16_40] : memref<1x16x32xbf16, #tpu.memory_space<vmem>>, vector<1x16x8xbf16>
    %79 = vector.shape_cast %78 : vector<1x16x8xbf16> to vector<16x8xbf16>
    %80 = vector.shape_cast %77 : vector<16x8xbf16> to vector<1x16x8xbf16>
    tpu.vector_store %arg2[%c0_38, %c0_39, %c16_40], %80 {strides = array<i32>} : memref<1x16x32xbf16, #tpu.memory_space<vmem>>, vector<1x16x8xbf16>,
    %c0_41 = arith.constant 0 : index
    %c0_42 = arith.constant 0 : index
    %c24 = arith.constant 24 : index
    %81 = vector.load %arg1[%c0_41, %c0_42, %c24] : memref<1x16x96xbf16, #tpu.memory_space<vmem>>, vector<1x16x8xbf16>
    %82 = vector.shape_cast %81 : vector<1x16x8xbf16> to vector<16x8xbf16>
    %83 = arith.extf %82 : vector<16x8xbf16> to vector<16x8xf32>
    %cst_43 = arith.constant 0.353553385 : f32
    %84 = vector.broadcast %cst_43 : f32 to vector<16x8xf32>
    %85 = arith.mulf %83, %84 : vector<16x8xf32>
    %86 = arith.truncf %85 : vector<16x8xf32> to vector<16x8xbf16>
    %c0_44 = arith.constant 0 : index
    %c0_45 = arith.constant 0 : index
    %c56 = arith.constant 56 : index
    %87 = vector.load %arg1[%c0_44, %c0_45, %c56] : memref<1x16x96xbf16, #tpu.memory_space<vmem>>, vector<1x16x8xbf16>
    %88 = vector.shape_cast %87 : vector<1x16x8xbf16> to vector<16x8xbf16>
    %c0_46 = arith.constant 0 : index
    %c0_47 = arith.constant 0 : index
    %c88 = arith.constant 88 : index
    %89 = vector.load %arg1[%c0_46, %c0_47, %c88] : memref<1x16x96xbf16, #tpu.memory_space<vmem>>, vector<1x16x8xbf16>
    %90 = vector.shape_cast %89 : vector<1x16x8xbf16> to vector<16x8xbf16>
    %cst_48 = arith.constant dense<0.000000e+00> : vector<16x16xf32>
    %91 = tpu.matmul %86, %88, %cst_48 {dimension_numbers = #tpu.dot_dimension_numbers<[1], [1], [0], [0], [0, 0, 1, 0], [], []>} : vector<16x8xbf16>, vector<16x8xbf16>, vector<16x16xf32> -> vector<16x16xf32>
    %cst_49 = arith.constant dense<0xFF800000> : vector<16xf32>
    %92 = vector.multi_reduction <maximumf>, %91, %cst_49 [1] : vector<16x16xf32> to vector<16xf32>
    %93 = vector.shape_cast %92 : vector<16xf32> to vector<16x1xf32>
    %94 = vector.broadcast %93 : vector<16x1xf32> to vector<16x16xf32>
    %95 = arith.subf %91, %94 : vector<16x16xf32>
    %96 = math.exp %95 : vector<16x16xf32>
    %cst_50 = arith.constant dense<0.000000e+00> : vector<16xf32>
    %97 = vector.multi_reduction <add>, %96, %cst_50 [1] : vector<16x16xf32> to vector<16xf32>
    %98 = vector.shape_cast %97 : vector<16xf32> to vector<16x1xf32>
    %99 = tpu.reciprocal %98 {approx = true} : vector<16x1xf32> -> vector<16x1xf32>
    %100 = vector.broadcast %99 : vector<16x1xf32> to vector<16x16xf32>
    %101 = arith.mulf %96, %100 : vector<16x16xf32>
    %102 = arith.truncf %101 : vector<16x16xf32> to vector<16x16xbf16>
    %cst_51 = arith.constant dense<0.000000e+00> : vector<16x8xf32>
    %103 = tpu.matmul %102, %90, %cst_51 {dimension_numbers = #tpu.dot_dimension_numbers<[1], [0], [0], [1], [0, 0, 1, 1], [], []>} : vector<16x16xbf16>, vector<16x8xbf16>, vector<16x8xf32> -> vector<16x8xf32>
    %104 = arith.truncf %103 : vector<16x8xf32> to vector<16x8xbf16>
    %c0_52 = arith.constant 0 : index
    %c0_53 = arith.constant 0 : index
    %c24_54 = arith.constant 24 : index
    %105 = vector.load %arg2[%c0_52, %c0_53, %c24_54] : memref<1x16x32xbf16, #tpu.memory_space<vmem>>, vector<1x16x8xbf16>
    %106 = vector.shape_cast %105 : vector<1x16x8xbf16> to vector<16x8xbf16>
    %107 = vector.shape_cast %104 : vector<16x8xbf16> to vector<1x16x8xbf16>
    tpu.vector_store %arg2[%c0_52, %c0_53, %c24_54], %107 {strides = array<i32>} : memref<1x16x32xbf16, #tpu.memory_space<vmem>>, vector<1x16x8xbf16>,
    return
  }
  func.func @transform_0(%arg0: i32) -> (i32, i32, i32) {
    %c0_i32 = arith.constant 0 : i32
    %c0_i32_0 = arith.constant 0 : i32
    %c0_i32_1 = arith.constant 0 : i32
    return %arg0, %c0_i32, %c0_i32_0 : i32, i32, i32
  }
  func.func @transform_1(%arg0: i32) -> (i32, i32, i32) {
    %c0_i32 = arith.constant 0 : i32
    %c0_i32_0 = arith.constant 0 : i32
    %c0_i32_1 = arith.constant 0 : i32
    return %arg0, %c0_i32, %c0_i32_0 : i32, i32, i32
  }
}

module attributes {stable_mosaic.version = 11 : i64} {
  func.func @kernel(%arg0: i32, %arg1: i32, %arg2: i32, %arg3: memref<32x32xbf16, #tpu.memory_space<vmem>>, %arg4: memref<32x32xbf16, #tpu.memory_space<vmem>>, %arg5: memref<1x32xf32, #tpu.memory_space<vmem>>, %arg6: memref<32x32xf32, #tpu.memory_space<vmem>>, %arg7: memref<32x32xf32, #tpu.memory_space<vmem>>, %arg8: memref<32x32xf32, #tpu.memory_space<vmem>>) attributes {dimension_semantics = [#tpu.dimension_semantics<parallel>, #tpu.dimension_semantics<parallel>, #tpu.dimension_semantics<arbitrary>], iteration_bounds = array<i64: 1, 1, 1>, scalar_prefetch = 0 : i64, scratch_operands = 1 : i64, tpu.core_type = #tpu.core_type<tc>, window_params = [{transform_indices = @transform_0, window_bounds = array<i64: 32, 32>}, {transform_indices = @transform_1, window_bounds = array<i64: 32, 32>}, {transform_indices = @transform_2, window_bounds = array<i64: 1, 32>}, {transform_indices = @transform_3, window_bounds = array<i64: 32, 32>}, {transform_indices = @transform_4, window_bounds = array<i64: 32, 32>}]} {
    %c0_i32 = arith.constant 0 : i32
    %0 = arith.cmpi eq, %arg2, %c0_i32 : i32
    %1 = arith.extui %0 : i1 to i32
    %c0_i32_0 = arith.constant 0 : i32
    %2 = arith.cmpi ne, %1, %c0_i32_0 : i32
    scf.if %2 {
      %cst_10 = arith.constant 0.000000e+00 : f32
      %12 = vector.broadcast %cst_10 : f32 to vector<32x32xf32>
      %c0_11 = arith.constant 0 : index
      %c0_12 = arith.constant 0 : index
      %13 = vector.load %arg8[%c0_11, %c0_12] : memref<32x32xf32, #tpu.memory_space<vmem>>, vector<32x32xf32>
      tpu.vector_store %arg8[%c0_11, %c0_12], %12 {strides = array<i32>} : memref<32x32xf32, #tpu.memory_space<vmem>>, vector<32x32xf32>,
    } else {
    }
    %c0 = arith.constant 0 : index
    %c0_1 = arith.constant 0 : index
    %3 = vector.load %arg8[%c0, %c0_1] : memref<32x32xf32, #tpu.memory_space<vmem>>, vector<32x32xf32>
    %c0_2 = arith.constant 0 : index
    %c0_3 = arith.constant 0 : index
    %4 = vector.load %arg3[%c0_2, %c0_3] : memref<32x32xbf16, #tpu.memory_space<vmem>>, vector<32x32xbf16>
    %c0_4 = arith.constant 0 : index
    %c0_5 = arith.constant 0 : index
    %5 = vector.load %arg4[%c0_4, %c0_5] : memref<32x32xbf16, #tpu.memory_space<vmem>>, vector<32x32xbf16>
    %cst = arith.constant dense<0.000000e+00> : vector<32x32xf32>
    %6 = tpu.matmul %4, %5, %cst {dimension_numbers = #tpu.dot_dimension_numbers<[1], [0], [0], [1], [0, 0, 1, 1], [], []>} : vector<32x32xbf16>, vector<32x32xbf16>, vector<32x32xf32> -> vector<32x32xf32>
    %7 = arith.addf %3, %6 : vector<32x32xf32>
    %c0_6 = arith.constant 0 : index
    %c0_7 = arith.constant 0 : index
    %8 = vector.load %arg8[%c0_6, %c0_7] : memref<32x32xf32, #tpu.memory_space<vmem>>, vector<32x32xf32>
    tpu.vector_store %arg8[%c0_6, %c0_7], %7 {strides = array<i32>} : memref<32x32xf32, #tpu.memory_space<vmem>>, vector<32x32xf32>,
    %c0_i32_8 = arith.constant 0 : i32
    %9 = arith.cmpi eq, %arg2, %c0_i32_8 : i32
    %10 = arith.extui %9 : i1 to i32
    %c0_i32_9 = arith.constant 0 : i32
    %11 = arith.cmpi ne, %10, %c0_i32_9 : i32
    scf.if %11 {
      %c0_10 = arith.constant 0 : index
      %c0_11 = arith.constant 0 : index
      %12 = vector.load %arg8[%c0_10, %c0_11] : memref<32x32xf32, #tpu.memory_space<vmem>>, vector<32x32xf32>
      %c0_12 = arith.constant 0 : index
      %c0_13 = arith.constant 0 : index
      %13 = vector.load %arg5[%c0_12, %c0_13] : memref<1x32xf32, #tpu.memory_space<vmem>>, vector<1x32xf32>
      %14 = vector.broadcast %13 : vector<1x32xf32> to vector<32x32xf32>
      %15 = arith.addf %12, %14 : vector<32x32xf32>
      %c0_14 = arith.constant 0 : index
      %c0_15 = arith.constant 0 : index
      %16 = vector.load %arg6[%c0_14, %c0_15] : memref<32x32xf32, #tpu.memory_space<vmem>>, vector<32x32xf32>
      %17 = arith.addf %15, %16 : vector<32x32xf32>
      %c0_16 = arith.constant 0 : index
      %c0_17 = arith.constant 0 : index
      %18 = vector.load %arg7[%c0_16, %c0_17] : memref<32x32xf32, #tpu.memory_space<vmem>>, vector<32x32xf32>
      tpu.vector_store %arg7[%c0_16, %c0_17], %17 {strides = array<i32>} : memref<32x32xf32, #tpu.memory_space<vmem>>, vector<32x32xf32>,
    } else {
    }
    return
  }
  func.func @transform_0(%arg0: i32, %arg1: i32, %arg2: i32) -> (i32, i32) {
    %c0_i32 = arith.constant 0 : i32
    return %arg0, %arg2 : i32, i32
  }
  func.func @transform_1(%arg0: i32, %arg1: i32, %arg2: i32) -> (i32, i32) {
    %c0_i32 = arith.constant 0 : i32
    return %arg2, %arg1 : i32, i32
  }
  func.func @transform_2(%arg0: i32, %arg1: i32, %arg2: i32) -> (i32, i32) {
    %c0_i32 = arith.constant 0 : i32
    %c0_i32_0 = arith.constant 0 : i32
    return %c0_i32, %arg1 : i32, i32
  }
  func.func @transform_3(%arg0: i32, %arg1: i32, %arg2: i32) -> (i32, i32) {
    %c0_i32 = arith.constant 0 : i32
    return %arg0, %arg1 : i32, i32
  }
  func.func @transform_4(%arg0: i32, %arg1: i32, %arg2: i32) -> (i32, i32) {
    %c0_i32 = arith.constant 0 : i32
    return %arg0, %arg1 : i32, i32
  }
}

module attributes {stable_mosaic.version = 11 : i64} {
  func.func @kernel(%arg0: i32, %arg1: i32, %arg2: i32, %arg3: memref<32x32xbf16, #tpu.memory_space<vmem>>, %arg4: memref<32x64xbf16, #tpu.memory_space<vmem>>, %arg5: memref<1x64xf32, #tpu.memory_space<vmem>>, %arg6: memref<32x64xbf16, #tpu.memory_space<vmem>>, %arg7: memref<32x64xf32, #tpu.memory_space<vmem>>) attributes {dimension_semantics = [#tpu.dimension_semantics<parallel>, #tpu.dimension_semantics<parallel>, #tpu.dimension_semantics<arbitrary>], iteration_bounds = array<i64: 1, 1, 1>, scalar_prefetch = 0 : i64, scratch_operands = 1 : i64, tpu.core_type = #tpu.core_type<tc>, window_params = [{transform_indices = @transform_0, window_bounds = array<i64: 32, 32>}, {transform_indices = @transform_1, window_bounds = array<i64: 32, 64>}, {transform_indices = @transform_2, window_bounds = array<i64: 1, 64>}, {transform_indices = @transform_3, window_bounds = array<i64: 32, 64>}]} {
    %c0_i32 = arith.constant 0 : i32
    %0 = arith.cmpi eq, %arg2, %c0_i32 : i32
    %1 = arith.extui %0 : i1 to i32
    %c0_i32_0 = arith.constant 0 : i32
    %2 = arith.cmpi ne, %1, %c0_i32_0 : i32
    scf.if %2 {
      %cst_10 = arith.constant 0.000000e+00 : f32
      %12 = vector.broadcast %cst_10 : f32 to vector<32x64xf32>
      %c0_11 = arith.constant 0 : index
      %c0_12 = arith.constant 0 : index
      %13 = vector.load %arg7[%c0_11, %c0_12] : memref<32x64xf32, #tpu.memory_space<vmem>>, vector<32x64xf32>
      tpu.vector_store %arg7[%c0_11, %c0_12], %12 {strides = array<i32>} : memref<32x64xf32, #tpu.memory_space<vmem>>, vector<32x64xf32>,
    } else {
    }
    %c0 = arith.constant 0 : index
    %c0_1 = arith.constant 0 : index
    %3 = vector.load %arg7[%c0, %c0_1] : memref<32x64xf32, #tpu.memory_space<vmem>>, vector<32x64xf32>
    %c0_2 = arith.constant 0 : index
    %c0_3 = arith.constant 0 : index
    %4 = vector.load %arg3[%c0_2, %c0_3] : memref<32x32xbf16, #tpu.memory_space<vmem>>, vector<32x32xbf16>
    %c0_4 = arith.constant 0 : index
    %c0_5 = arith.constant 0 : index
    %5 = vector.load %arg4[%c0_4, %c0_5] : memref<32x64xbf16, #tpu.memory_space<vmem>>, vector<32x64xbf16>
    %cst = arith.constant dense<0.000000e+00> : vector<32x64xf32>
    %6 = tpu.matmul %4, %5, %cst {dimension_numbers = #tpu.dot_dimension_numbers<[1], [0], [0], [1], [0, 0, 1, 1], [], []>} : vector<32x32xbf16>, vector<32x64xbf16>, vector<32x64xf32> -> vector<32x64xf32>
    %7 = arith.addf %3, %6 : vector<32x64xf32>
    %c0_6 = arith.constant 0 : index
    %c0_7 = arith.constant 0 : index
    %8 = vector.load %arg7[%c0_6, %c0_7] : memref<32x64xf32, #tpu.memory_space<vmem>>, vector<32x64xf32>
    tpu.vector_store %arg7[%c0_6, %c0_7], %7 {strides = array<i32>} : memref<32x64xf32, #tpu.memory_space<vmem>>, vector<32x64xf32>,
    %c0_i32_8 = arith.constant 0 : i32
    %9 = arith.cmpi eq, %arg2, %c0_i32_8 : i32
    %10 = arith.extui %9 : i1 to i32
    %c0_i32_9 = arith.constant 0 : i32
    %11 = arith.cmpi ne, %10, %c0_i32_9 : i32
    scf.if %11 {
      %c0_10 = arith.constant 0 : index
      %c0_11 = arith.constant 0 : index
      %12 = vector.load %arg7[%c0_10, %c0_11] : memref<32x64xf32, #tpu.memory_space<vmem>>, vector<32x64xf32>
      %c0_12 = arith.constant 0 : index
      %c0_13 = arith.constant 0 : index
      %13 = vector.load %arg5[%c0_12, %c0_13] : memref<1x64xf32, #tpu.memory_space<vmem>>, vector<1x64xf32>
      %14 = vector.broadcast %13 : vector<1x64xf32> to vector<32x64xf32>
      %15 = arith.addf %12, %14 : vector<32x64xf32>
      %cst_14 = arith.constant 5.000000e-01 : f32
      %16 = vector.broadcast %cst_14 : f32 to vector<32x64xf32>
      %17 = arith.mulf %16, %15 : vector<32x64xf32>
      %cst_15 = arith.constant 4.471500e-02 : f32
      %18 = vector.broadcast %cst_15 : f32 to vector<32x64xf32>
      %19 = arith.mulf %18, %15 : vector<32x64xf32>
      %20 = arith.mulf %19, %15 : vector<32x64xf32>
      %21 = arith.mulf %20, %15 : vector<32x64xf32>
      %22 = arith.addf %15, %21 : vector<32x64xf32>
      %cst_16 = arith.constant 0.797884583 : f32
      %23 = vector.broadcast %cst_16 : f32 to vector<32x64xf32>
      %24 = arith.mulf %23, %22 : vector<32x64xf32>
      %25 = math.tanh %24 : vector<32x64xf32>
      %cst_17 = arith.constant 1.000000e+00 : f32
      %26 = vector.broadcast %cst_17 : f32 to vector<32x64xf32>
      %27 = arith.addf %26, %25 : vector<32x64xf32>
      %28 = arith.mulf %17, %27 : vector<32x64xf32>
      %29 = arith.truncf %28 : vector<32x64xf32> to vector<32x64xbf16>
      %c0_18 = arith.constant 0 : index
      %c0_19 = arith.constant 0 : index
      %30 = vector.load %arg6[%c0_18, %c0_19] : memref<32x64xbf16, #tpu.memory_space<vmem>>, vector<32x64xbf16>
      tpu.vector_store %arg6[%c0_18, %c0_19], %29 {strides = array<i32>} : memref<32x64xbf16, #tpu.memory_space<vmem>>, vector<32x64xbf16>,
    } else {
    }
    return
  }
  func.func @transform_0(%arg0: i32, %arg1: i32, %arg2: i32) -> (i32, i32) {
    %c0_i32 = arith.constant 0 : i32
    return %arg0, %arg2 : i32, i32
  }
  func.func @transform_1(%arg0: i32, %arg1: i32, %arg2: i32) -> (i32, i32) {
    %c0_i32 = arith.constant 0 : i32
    return %arg2, %arg1 : i32, i32
  }
  func.func @transform_2(%arg0: i32, %arg1: i32, %arg2: i32) -> (i32, i32) {
    %c0_i32 = arith.constant 0 : i32
    %c0_i32_0 = arith.constant 0 : i32
    return %c0_i32, %arg1 : i32, i32
  }
  func.func @transform_3(%arg0: i32, %arg1: i32, %arg2: i32) -> (i32, i32) {
    %c0_i32 = arith.constant 0 : i32
    return %arg0, %arg1 : i32, i32
  }
}

module attributes {stable_mosaic.version = 11 : i64} {
  func.func @kernel(%arg0: i32, %arg1: i32, %arg2: i32, %arg3: memref<32x64xbf16, #tpu.memory_space<vmem>>, %arg4: memref<64x32xbf16, #tpu.memory_space<vmem>>, %arg5: memref<1x32xf32, #tpu.memory_space<vmem>>, %arg6: memref<32x32xf32, #tpu.memory_space<vmem>>, %arg7: memref<32x32xf32, #tpu.memory_space<vmem>>, %arg8: memref<32x32xf32, #tpu.memory_space<vmem>>) attributes {dimension_semantics = [#tpu.dimension_semantics<parallel>, #tpu.dimension_semantics<parallel>, #tpu.dimension_semantics<arbitrary>], iteration_bounds = array<i64: 1, 1, 1>, scalar_prefetch = 0 : i64, scratch_operands = 1 : i64, tpu.core_type = #tpu.core_type<tc>, window_params = [{transform_indices = @transform_0, window_bounds = array<i64: 32, 64>}, {transform_indices = @transform_1, window_bounds = array<i64: 64, 32>}, {transform_indices = @transform_2, window_bounds = array<i64: 1, 32>}, {transform_indices = @transform_3, window_bounds = array<i64: 32, 32>}, {transform_indices = @transform_4, window_bounds = array<i64: 32, 32>}]} {
    %c0_i32 = arith.constant 0 : i32
    %0 = arith.cmpi eq, %arg2, %c0_i32 : i32
    %1 = arith.extui %0 : i1 to i32
    %c0_i32_0 = arith.constant 0 : i32
    %2 = arith.cmpi ne, %1, %c0_i32_0 : i32
    scf.if %2 {
      %cst_10 = arith.constant 0.000000e+00 : f32
      %12 = vector.broadcast %cst_10 : f32 to vector<32x32xf32>
      %c0_11 = arith.constant 0 : index
      %c0_12 = arith.constant 0 : index
      %13 = vector.load %arg8[%c0_11, %c0_12] : memref<32x32xf32, #tpu.memory_space<vmem>>, vector<32x32xf32>
      tpu.vector_store %arg8[%c0_11, %c0_12], %12 {strides = array<i32>} : memref<32x32xf32, #tpu.memory_space<vmem>>, vector<32x32xf32>,
    } else {
    }
    %c0 = arith.constant 0 : index
    %c0_1 = arith.constant 0 : index
    %3 = vector.load %arg8[%c0, %c0_1] : memref<32x32xf32, #tpu.memory_space<vmem>>, vector<32x32xf32>
    %c0_2 = arith.constant 0 : index
    %c0_3 = arith.constant 0 : index
    %4 = vector.load %arg3[%c0_2, %c0_3] : memref<32x64xbf16, #tpu.memory_space<vmem>>, vector<32x64xbf16>
    %c0_4 = arith.constant 0 : index
    %c0_5 = arith.constant 0 : index
    %5 = vector.load %arg4[%c0_4, %c0_5] : memref<64x32xbf16, #tpu.memory_space<vmem>>, vector<64x32xbf16>
    %cst = arith.constant dense<0.000000e+00> : vector<32x32xf32>
    %6 = tpu.matmul %4, %5, %cst {dimension_numbers = #tpu.dot_dimension_numbers<[1], [0], [0], [1], [0, 0, 1, 1], [], []>} : vector<32x64xbf16>, vector<64x32xbf16>, vector<32x32xf32> -> vector<32x32xf32>
    %7 = arith.addf %3, %6 : vector<32x32xf32>
    %c0_6 = arith.constant 0 : index
    %c0_7 = arith.constant 0 : index
    %8 = vector.load %arg8[%c0_6, %c0_7] : memref<32x32xf32, #tpu.memory_space<vmem>>, vector<32x32xf32>
    tpu.vector_store %arg8[%c0_6, %c0_7], %7 {strides = array<i32>} : memref<32x32xf32, #tpu.memory_space<vmem>>, vector<32x32xf32>,
    %c0_i32_8 = arith.constant 0 : i32
    %9 = arith.cmpi eq, %arg2, %c0_i32_8 : i32
    %10 = arith.extui %9 : i1 to i32
    %c0_i32_9 = arith.constant 0 : i32
    %11 = arith.cmpi ne, %10, %c0_i32_9 : i32
    scf.if %11 {
      %c0_10 = arith.constant 0 : index
      %c0_11 = arith.constant 0 : index
      %12 = vector.load %arg8[%c0_10, %c0_11] : memref<32x32xf32, #tpu.memory_space<vmem>>, vector<32x32xf32>
      %c0_12 = arith.constant 0 : index
      %c0_13 = arith.constant 0 : index
      %13 = vector.load %arg5[%c0_12, %c0_13] : memref<1x32xf32, #tpu.memory_space<vmem>>, vector<1x32xf32>
      %14 = vector.broadcast %13 : vector<1x32xf32> to vector<32x32xf32>
      %15 = arith.addf %12, %14 : vector<32x32xf32>
      %c0_14 = arith.constant 0 : index
      %c0_15 = arith.constant 0 : index
      %16 = vector.load %arg6[%c0_14, %c0_15] : memref<32x32xf32, #tpu.memory_space<vmem>>, vector<32x32xf32>
      %17 = arith.addf %15, %16 : vector<32x32xf32>
      %c0_16 = arith.constant 0 : index
      %c0_17 = arith.constant 0 : index
      %18 = vector.load %arg7[%c0_16, %c0_17] : memref<32x32xf32, #tpu.memory_space<vmem>>, vector<32x32xf32>
      tpu.vector_store %arg7[%c0_16, %c0_17], %17 {strides = array<i32>} : memref<32x32xf32, #tpu.memory_space<vmem>>, vector<32x32xf32>,
    } else {
    }
    return
  }
  func.func @transform_0(%arg0: i32, %arg1: i32, %arg2: i32) -> (i32, i32) {
    %c0_i32 = arith.constant 0 : i32
    return %arg0, %arg2 : i32, i32
  }
  func.func @transform_1(%arg0: i32, %arg1: i32, %arg2: i32) -> (i32, i32) {
    %c0_i32 = arith.constant 0 : i32
    return %arg2, %arg1 : i32, i32
  }
  func.func @transform_2(%arg0: i32, %arg1: i32, %arg2: i32) -> (i32, i32) {
    %c0_i32 = arith.constant 0 : i32
    %c0_i32_0 = arith.constant 0 : i32
    return %c0_i32, %arg1 : i32, i32
  }
  func.func @transform_3(%arg0: i32, %arg1: i32, %arg2: i32) -> (i32, i32) {
    %c0_i32 = arith.constant 0 : i32
    return %arg0, %arg1 : i32, i32
  }
  func.func @transform_4(%arg0: i32, %arg1: i32, %arg2: i32) -> (i32, i32) {
    %c0_i32 = arith.constant 0 : i32
    return %arg0, %arg1 : i32, i32
  }
}

module attributes {stable_mosaic.version = 11 : i64} {
  func.func @_resize_l2norm_kernel(%arg0: i32, %arg1: memref<4x16xf32, #tpu.memory_space<vmem>>, %arg2: memref<1x16x32xf32, #tpu.memory_space<vmem>>, %arg3: memref<1x4x32xf32, #tpu.memory_space<vmem>>) attributes {dimension_semantics = [#tpu.dimension_semantics<parallel>], iteration_bounds = array<i64: 2>, scalar_prefetch = 0 : i64, scratch_operands = 0 : i64, tpu.core_type = #tpu.core_type<tc>, window_params = [{pipeline_mode = #tpu.pipeline_mode<synchronous>, transform_indices = @transform_0, window_bounds = array<i64: 4, 16>}, {transform_indices = @transform_1, window_bounds = array<i64: 1, 16, 32>}, {transform_indices = @transform_2, window_bounds = array<i64: 1, 4, 32>}]} {
    %c0 = arith.constant 0 : index
    %c0_0 = arith.constant 0 : index
    %0 = vector.load %arg1[%c0, %c0_0] : memref<4x16xf32, #tpu.memory_space<vmem>>, vector<4x16xf32>
    %c0_1 = arith.constant 0 : index
    %c0_2 = arith.constant 0 : index
    %c0_3 = arith.constant 0 : index
    %1 = vector.load %arg2[%c0_1, %c0_2, %c0_3] : memref<1x16x32xf32, #tpu.memory_space<vmem>>, vector<1x16x32xf32>
    %2 = vector.shape_cast %1 : vector<1x16x32xf32> to vector<16x32xf32>
    %cst = arith.constant dense<0.000000e+00> : vector<4x32xf32>
    %3 = tpu.matmul %0, %2, %cst {dimension_numbers = #tpu.dot_dimension_numbers<[1], [0], [0], [1], [0, 0, 1, 1], [], []>} : vector<4x16xf32>, vector<16x32xf32>, vector<4x32xf32> -> vector<4x32xf32>
    %4 = arith.mulf %3, %3 : vector<4x32xf32>
    %cst_4 = arith.constant dense<0.000000e+00> : vector<4xf32>
    %5 = vector.multi_reduction <add>, %4, %cst_4 [1] : vector<4x32xf32> to vector<4xf32>
    %6 = vector.shape_cast %5 : vector<4xf32> to vector<4x1xf32>
    %7 = math.sqrt %6 : vector<4x1xf32>
    %cst_5 = arith.constant 9.99999996E-13 : f32
    %8 = vector.broadcast %cst_5 : f32 to vector<4x1xf32>
    %9 = arith.maximumf %7, %8 : vector<4x1xf32>
    %10 = vector.broadcast %9 : vector<4x1xf32> to vector<4x32xf32>
    %11 = arith.divf %3, %10 : vector<4x32xf32>
    %c0_6 = arith.constant 0 : index
    %c0_7 = arith.constant 0 : index
    %c0_8 = arith.constant 0 : index
    %12 = vector.load %arg3[%c0_6, %c0_7, %c0_8] : memref<1x4x32xf32, #tpu.memory_space<vmem>>, vector<1x4x32xf32>
    %13 = vector.shape_cast %12 : vector<1x4x32xf32> to vector<4x32xf32>
    %14 = vector.shape_cast %11 : vector<4x32xf32> to vector<1x4x32xf32>
    tpu.vector_store %arg3[%c0_6, %c0_7, %c0_8], %14 {strides = array<i32>} : memref<1x4x32xf32, #tpu.memory_space<vmem>>, vector<1x4x32xf32>,
    return
  }
  func.func @transform_0(%arg0: i32) -> (i32, i32) {
    %c0_i32 = arith.constant 0 : i32
    %c0_i32_0 = arith.constant 0 : i32
    %c0_i32_1 = arith.constant 0 : i32
    return %c0_i32, %c0_i32_0 : i32, i32
  }
  func.func @transform_1(%arg0: i32) -> (i32, i32, i32) {
    %c0_i32 = arith.constant 0 : i32
    %c0_i32_0 = arith.constant 0 : i32
    %c0_i32_1 = arith.constant 0 : i32
    return %arg0, %c0_i32, %c0_i32_0 : i32, i32, i32
  }
  func.func @transform_2(%arg0: i32) -> (i32, i32, i32) {
    %c0_i32 = arith.constant 0 : i32
    %c0_i32_0 = arith.constant 0 : i32
    %c0_i32_1 = arith.constant 0 : i32
    return %arg0, %c0_i32, %c0_i32_0 : i32, i32, i32
  }
}

</mosaic_0001>

<bundles_post_ra>
// kernel: _lambda_.16
= control target key start
LH: loop header
LB: loop body
LE: loop exit
PB: predicated region body
PF: predicated region fallthrough
CT: control target
= control target key end

     0   :  { %vm22_vm0 = vcmask 261120   ;;  %v197_v1 = vmov 0.0   ;;  %vm69_vm1 = vcmask 392192   ;;  %s277_s1 = inlined_call_operand.vmem [shape: bf16[48,32], index: 1, kind: input, shape index: {}]   ;;  %s278_s0 = inlined_call_operand.vmem [shape: bf16[32,48], index: 0, kind: input, shape index: {}]   ;;  %s279_s2 = inlined_call_operand.vmem [shape: f32[1,32], index: 2, kind: input, shape index: {}]   ;;  %s280_s3 = inlined_call_operand.vmem [shape: f32[32,32], index: 3, kind: input, shape index: {}, may-alias: {3,4}]   ;;  %s281_s4 = inlined_call_operand.vmem [shape: f32[32,32], index: 4, kind: output, shape index: {}, may-alias: {3,4}]  }
   0x1   :  { %v192_v0 = vld [vmem:[%s277_s1] sm:$0xff]   ;;  %25 = vst.msk [vmem:[#allocation2 + $0x10] sm:$0xff] %vm22_vm0, %v197_v1  ;;  %23 = vst.msk [vmem:[#allocation2] sm:$0xff] %vm22_vm0, %v197_v1  ;;  %v193_v2 = vld [vmem:[%s277_s1 + $0x8] sm:$0xff]  }
   0x2   :  { %24 = vst.msk [vmem:[#allocation2 + $0x8] sm:$0xff] %vm22_vm0, %v197_v1  ;;  %26 = vst.msk [vmem:[#allocation2 + $0x18] sm:$0xff] %vm22_vm0, %v197_v1  ;;  %181 = vmatprep.subr.bf16.mxu0 %v192_v0  ;;  %v195_v3 = vld [vmem:[%s278_s0] sm:$0xff]   ;;  %v194_v4 = vld [vmem:[%s277_s1 + $0x10] sm:$0xff]  }
   0x3   :  { %182 = vmatpush3.bf16.msra.mxu0 %v192_v0  ;;  %187 = vmatprep.mubr.msk.bf16.mxu0 %vm69_vm1, %v195_v3  ;;  %v196_v5 = vld [vmem:[%s278_s0 + $0x8] sm:$0xff]   ;;  %v175_v18 = vld [vmem:[%s279_s2] ss:$0 sm:$0xff]  ;;  %v154_v20 = vld [vmem:[%s280_s3 + $0x10] sm:$0xff] }
   0x4   :  { %183 = vmatprep.subr.bf16.mxu0 %v193_v2  ;;  %v152_v23 = vld [vmem:[%s280_s3] sm:$0xff]  ;;  %v155_v26 = vld [vmem:[%s280_s3 + $0x18] sm:$0xff]  ;;  %v153_v30 = vld [vmem:[%s280_s3 + $0x8] sm:$0xff] }
   0x7   :  { %184 = vmatpush3.bf16.msra.mxu0 %v193_v2 }
   0x8   :  { %185 = vmatprep.subr.bf16.mxu0 %v194_v4  ;;  %v29_v6 = vld [vmem:[#allocation2 + $0x10] sm:$0xff]  ;;  %v27_v7 = vld [vmem:[#allocation2] sm:$0xff] }
   0x9   :  { %v30_v9 = vld [vmem:[#allocation2 + $0x18] sm:$0xff]  ;;  %v28_v12 = vld [vmem:[#allocation2 + $0x8] sm:$0xff] }
   0xb   :  { %186 = vmatpush3.bf16.msra.mxu0 %v194_v4 }
   0xe   :  { %188 = vmatmul.mubr.msk.bf16.vlgmr.msra.gmra.mrb[0].mxu0 %vm69_vm1, %v196_v5 }
  0xe1   :  { %v189_v8 = vpop.f32.mrb[0].mxu0 }
  0xe2   :  { %v127_v10 = vadd.f32 %v189_v8, %v29_v6  ;;  %v110_v11 = vpop.f32.mrb[1].mxu0 }
  0xe3   :  { %v125_v13 = vadd.f32 %v110_v11, %v27_v7  ;;  %v190_v14 = vpop.f32.mrb[2].mxu0 }
  0xe4   :  { %132 = vst.msk [vmem:[#allocation2 + $0x10] sm:$0xff] %vm22_vm0, %v127_v10  ;;  %v128_v15 = vadd.f32 %v190_v14, %v30_v9  ;;  %v113_v16 = vpop.f32.mrb[3].mxu0 }
  0xe5   :  { %130 = vst.msk [vmem:[#allocation2] sm:$0xff] %vm22_vm0, %v125_v13  ;;  %v126_v17 = vadd.f32 %v113_v16, %v28_v12 }
  0xe6   :  { %133 = vst.msk [vmem:[#allocation2 + $0x18] sm:$0xff] %vm22_vm0, %v128_v15 }
  0xe7   :  { %131 = vst.msk [vmem:[#allocation2 + $0x8] sm:$0xff] %vm22_vm0, %v126_v17 }
  0xeb   :  { %v139_v19 = vld [vmem:[#allocation2 + $0x10] sm:$0xff] }
  0xec   :  { %v150_v21 = vadd.f32 %v175_v18, %v139_v19  ;;  %v137_v22 = vld [vmem:[#allocation2] sm:$0xff] }
  0xed   :  { %v148_v24 = vadd.f32 %v175_v18, %v137_v22  ;;  %v140_v25 = vld [vmem:[#allocation2 + $0x18] sm:$0xff] }
  0xee   :  { %v158_v27 = vadd.f32 %v154_v20, %v150_v21  ;;  %v151_v28 = vadd.f32 %v175_v18, %v140_v25  ;;  %v138_v29 = vld [vmem:[#allocation2 + $0x8] sm:$0xff] }
  0xef   :  { %v156_v31 = vadd.f32 %v152_v23, %v148_v24  ;;  %v149_v32 = vadd.f32 %v175_v18, %v138_v29 }
  0xf0   :  { %162 = vst.msk [vmem:[%s281_s4 + $0x10] sm:$0xff] %vm22_vm0, %v158_v27  ;;  %v159_v33 = vadd.f32 %v155_v26, %v151_v28 }
  0xf1   :  { %160 = vst.msk [vmem:[%s281_s4] sm:$0xff] %vm22_vm0, %v156_v31  ;;  %v157_v34 = vadd.f32 %v153_v30, %v149_v32 }
  0xf2   :  { %163 = vst.msk [vmem:[%s281_s4 + $0x18] sm:$0xff] %vm22_vm0, %v159_v33 }
  0xf3   :  { %161 = vst.msk [vmem:[%s281_s4 + $0x8] sm:$0xff] %vm22_vm0, %v157_v34 }

// kernel: _lambda_.18
= control target key start
LH: loop header
LB: loop body
LE: loop exit
PB: predicated region body
PF: predicated region fallthrough
CT: control target
= control target key end

     0   :  { %vm19_vm0 = vcmask 785408   ;;  %v198_v1 = vmov 0.0   ;;  %vm58_vm1 = vcmask 261120   ;;  %vm157_vm2 = vcmask 781312   ;;  %s254_s1 = inlined_call_operand.vmem [shape: bf16[32,96], index: 1, kind: input, shape index: {}]   ;;  %s255_s0 = inlined_call_operand.vmem [shape: bf16[32,32], index: 0, kind: input, shape index: {}]   ;;  %s256_s2 = inlined_call_operand.vmem [shape: f32[1,96], index: 2, kind: input, shape index: {}]   ;;  %s257_s3 = inlined_call_operand.vmem [shape: bf16[32,96], index: 3, kind: output, shape index: {}]  }
   0x1   :  { %v194_v0 = vld [vmem:[%s254_s1] sm:$0xff]   ;;  %22 = vst.msk [vmem:[#allocation2 + $0x10] sm:$0xff] %vm19_vm0, %v198_v1  ;;  %20 = vst.msk [vmem:[#allocation2] sm:$0xff] %vm19_vm0, %v198_v1  ;;  %v195_v2 = vld [vmem:[%s254_s1 + $0x8] sm:$0xff]  }
   0x2   :  { %21 = vst.msk [vmem:[#allocation2 + $0x8] sm:$0xff] %vm19_vm0, %v198_v1  ;;  %23 = vst.msk [vmem:[#allocation2 + $0x18] sm:$0xff] %vm19_vm0, %v198_v1  ;;  %185 = vmatprep.subr.bf16.mxu0 %v194_v0  ;;  %v196_v3 = vld [vmem:[%s255_s0] sm:$0xff]   ;;  %v197_v4 = vld [vmem:[%s255_s0 + $0x8] sm:$0xff]  }
   0x3   :  { %186 = vmatpush3.bf16.msra.mxu0 %v194_v0  ;;  %189 = vmatprep.mubr.msk.bf16.mxu0 %vm58_vm1, %v196_v3  ;;  %v172_v17 = vld [vmem:[%s256_s2] ss:$0 sm:$0xff] }
   0x4   :  { %187 = vmatprep.subr.bf16.mxu0 %v195_v2 }
   0x7   :  { %188 = vmatpush3.bf16.msra.mxu0 %v195_v2 }
   0x8   :  { %v26_v5 = vld [vmem:[#allocation2 + $0x10] sm:$0xff]  ;;  %v24_v6 = vld [vmem:[#allocation2] sm:$0xff] }
   0x9   :  { %v27_v8 = vld [vmem:[#allocation2 + $0x18] sm:$0xff]  ;;  %v25_v11 = vld [vmem:[#allocation2 + $0x8] sm:$0xff] }
   0xa   :  { %190 = vmatmul.mubr.msk.bf16.vlgmr.msra.gmra.mrb[0].mxu0 %vm58_vm1, %v197_v4 }
  0xdd   :  { %v191_v7 = vpop.f32.mrb[0].mxu0 }
  0xde   :  { %v116_v9 = vadd.f32 %v191_v7, %v26_v5  ;;  %v99_v10 = vpop.f32.mrb[1].mxu0 }
  0xdf   :  { %v114_v12 = vadd.f32 %v99_v10, %v24_v6  ;;  %v192_v13 = vpop.f32.mrb[2].mxu0 }
  0xe0   :  { %121 = vst.msk [vmem:[#allocation2 + $0x10] sm:$0xff] %vm19_vm0, %v116_v9  ;;  %v117_v14 = vadd.f32 %v192_v13, %v27_v8  ;;  %v102_v15 = vpop.f32.mrb[3].mxu0 }
  0xe1   :  { %119 = vst.msk [vmem:[#allocation2] sm:$0xff] %vm19_vm0, %v114_v12  ;;  %v115_v16 = vadd.f32 %v102_v15, %v25_v11 }
  0xe2   :  { %122 = vst.msk [vmem:[#allocation2 + $0x18] sm:$0xff] %vm19_vm0, %v117_v14 }
  0xe3   :  { %120 = vst.msk [vmem:[#allocation2 + $0x8] sm:$0xff] %vm19_vm0, %v115_v16 }
  0xe7   :  { %v128_v18 = vld [vmem:[#allocation2 + $0x10] sm:$0xff] }
  0xe8   :  { %v139_v19 = vadd.f32 %v172_v17, %v128_v18  ;;  %v126_v20 = vld [vmem:[#allocation2] sm:$0xff] }
  0xe9   :  { %v137_v21 = vadd.f32 %v172_v17, %v126_v20  ;;  %v129_v22 = vld [vmem:[#allocation2 + $0x18] sm:$0xff] }
  0xea   :  { %v179_v23 = vpack.c.bf16 %v139_v19, %v139_v19  ;;  %v140_v24 = vadd.f32 %v172_v17, %v129_v22  ;;  %v127_v25 = vld [vmem:[#allocation2 + $0x8] sm:$0xff] }
  0xeb   :  { %v177_v26 = vpack.c.bf16 %v137_v21, %v137_v21  ;;  %v138_v27 = vadd.f32 %v172_v17, %v127_v25 }
  0xec   :  { %160 = vst.msk [vmem:[%s257_s3 + $0x8] sm:$0xf] %vm157_vm2, %v179_v23  ;;  %v180_v28 = vpack.c.bf16 %v140_v24, %v140_v24 }
  0xed   :  { %158 = vst.msk [vmem:[%s257_s3] sm:$0xf] %vm157_vm2, %v177_v26  ;;  %v178_v29 = vpack.c.bf16 %v138_v27, %v138_v27 }
  0xee   :  { %161 = vst.msk [vmem:[%s257_s3 + $0xc] sm:$0xf] %vm157_vm2, %v180_v28 }
  0xef   :  { %159 = vst.msk [vmem:[%s257_s3 + $0x4] sm:$0xf] %vm157_vm2, %v178_v29 }

// kernel: _lambda_.17
= control target key start
LH: loop header
LB: loop body
LE: loop exit
PB: predicated region body
PF: predicated region fallthrough
CT: control target
= control target key end

     0   :  { %vm18_vm0 = vcmask 261120   ;;  %vm110_vm1 = vcmask 257024   ;;  %s199_s0 = inlined_call_operand.vmem [shape: f32[32,32], index: 0, kind: input, shape index: {}]   ;;  %s200_s1 = inlined_call_operand.vmem [shape: f32[1,32], index: 1, kind: input, shape index: {}]   ;;  %s201_s2 = inlined_call_operand.vmem [shape: f32[1,32], index: 2, kind: input, shape index: {}]   ;;  %s202_s3 = inlined_call_operand.vmem [shape: bf16[32,32], index: 3, kind: output, shape index: {}]  }
   0x1   :  { %v14_v0 = vld [vmem:[%s199_s0] sm:$0xff]  ;;  %v16_v1 = vld [vmem:[%s199_s0 + $0x10] sm:$0xff]  ;;  %v15_v2 = vld [vmem:[%s199_s0 + $0x8] sm:$0xff] }
   0x2   :  { %v19_v3 = vsel %vm18_vm0, %v14_v0, 0.0  ;;  %v25_v4 = vsel %vm18_vm0, %v16_v1, 0.0  ;;  %v17_v5 = vld [vmem:[%s199_s0 + $0x18] sm:$0xff]  ;;  %v22_v6 = vsel %vm18_vm0, %v15_v2, 0.0  ;;  %v119_v41 = vld [vmem:[%s200_s1] ss:$0 sm:$0xff] }
   0x3   :  { %20 = vadd.xlane.f32.xlu0 %v19_v3  ;;  %26 = vadd.xlane.f32.xlu1 %v25_v4  ;;  %v28_v7 = vsel %vm18_vm0, %v17_v5, 0.0  ;;  %v120_v43 = vld [vmem:[%s201_s2] ss:$0 sm:$0xff] }
   0x7   :  { %23 = vadd.xlane.f32.xlu0 %v22_v6  ;;  %29 = vadd.xlane.f32.xlu1 %v28_v7 }
  0x90   :  { %v21_v8 = vpop.xlane.xlu0 %20  ;;  %v27_v9 = vpop.xlane.xlu1 %26 }
  0x91   :  { %v32_v10 = vmul.f32 0.03125, %v21_v8  ;;  %v34_v11 = vmul.f32 0.03125, %v27_v9 }
  0x93   :  { %v36_v12 = vsub.f32 %v14_v0, %v32_v10  ;;  %v38_v13 = vsub.f32 %v16_v1, %v34_v11 }
  0x94   :  { %v24_v14 = vpop.xlane.xlu0 %23  ;;  %v30_v15 = vpop.xlane.xlu1 %29 }
  0x95   :  { %v33_v16 = vmul.f32 0.03125, %v24_v14  ;;  %v35_v17 = vmul.f32 0.03125, %v30_v15  ;;  %v40_v18 = vmul.f32 %v36_v12, %v36_v12  ;;  %v42_v19 = vmul.f32 %v38_v13, %v38_v13 }
  0x97   :  { %v37_v20 = vsub.f32 %v15_v2, %v33_v16  ;;  %v39_v21 = vsub.f32 %v17_v5, %v35_v17  ;;  %v44_v22 = vsel %vm18_vm0, %v40_v18, 0.0  ;;  %v50_v23 = vsel %vm18_vm0, %v42_v19, 0.0 }
  0x98   :  { %45 = vadd.xlane.f32.xlu0 %v44_v22 }
  0x99   :  { %v41_v24 = vmul.f32 %v37_v20, %v37_v20  ;;  %v43_v25 = vmul.f32 %v39_v21, %v39_v21 }
  0x9b   :  { %v47_v26 = vsel %vm18_vm0, %v41_v24, 0.0  ;;  %v53_v27 = vsel %vm18_vm0, %v43_v25, 0.0 }
  0x9c   :  { %51 = vadd.xlane.f32.xlu0 %v50_v23  ;;  %48 = vadd.xlane.f32.xlu1 %v47_v26 }
  0xa0   :  { %54 = vadd.xlane.f32.xlu1 %v53_v27 }
 0x125   :  { %v46_v28 = vpop.xlane.xlu0 %45 }
 0x126   :  { %v56_v29 = vmul.f32 0.03125, %v46_v28 }
 0x128   :  { %v60_v30 = vadd.f32 1e-06, %v56_v29 }
 0x129   :  { %v49_v31 = vpop.xlane.xlu1 %48  ;;  %v52_v32 = vpop.xlane.xlu0 %51 }
 0x12a   :  { %129 = vrsqrt.f32 %v60_v30  ;;  %v57_v33 = vmul.f32 0.03125, %v49_v31  ;;  %v58_v34 = vmul.f32 0.03125, %v52_v32 }
 0x12c   :  { %v61_v35 = vadd.f32 1e-06, %v57_v33  ;;  %v62_v36 = vadd.f32 1e-06, %v58_v34 }
 0x12d   :  { %v55_v37 = vpop.xlane.xlu1 %54 }
 0x12e   :  { %131 = vrsqrt.f32 %v61_v35  ;;  %v59_v38 = vmul.f32 0.03125, %v55_v37 }
 0x12f   :  { %133 = vrsqrt.f32 %v62_v36 }
 0x130   :  { %v63_v39 = vadd.f32 1e-06, %v59_v38 }
 0x132   :  { %135 = vrsqrt.f32 %v63_v39 }
 0x134   :  { %v130_v40 = vpop.eup %129 }
 0x135   :  { %v68_v42 = vmul.f32 %v130_v40, %v36_v12 }
 0x137   :  { %v79_v44 = vmul.f32 %v119_v41, %v68_v42 }
 0x138   :  { %v132_v45 = vpop.eup %131 }
 0x139   :  { %v134_v46 = vpop.eup %133  ;;  %v90_v47 = vadd.f32 %v120_v43, %v79_v44  ;;  %v69_v48 = vmul.f32 %v132_v45, %v37_v20 }
 0x13a   :  { %v70_v49 = vmul.f32 %v134_v46, %v38_v13 }
 0x13b   :  { %v125_v50 = vpack.c.bf16 %v90_v47, %v90_v47  ;;  %v80_v51 = vmul.f32 %v119_v41, %v69_v48 }
 0x13c   :  { %v136_v52 = vpop.eup %135  ;;  %v81_v53 = vmul.f32 %v119_v41, %v70_v49 }
 0x13d   :  { %111 = vst.msk [vmem:[%s202_s3] sm:$0xf] %vm110_vm1, %v125_v50  ;;  %v91_v54 = vadd.f32 %v120_v43, %v80_v51  ;;  %v71_v55 = vmul.f32 %v136_v52, %v39_v21 }
 0x13e   :  { %v92_v56 = vadd.f32 %v120_v43, %v81_v53 }
 0x13f   :  { %v126_v57 = vpack.c.bf16 %v91_v54, %v91_v54  ;;  %v82_v58 = vmul.f32 %v119_v41, %v71_v55 }
 0x140   :  { %v127_v59 = vpack.c.bf16 %v92_v56, %v92_v56 }
 0x141   :  { %112 = vst.msk [vmem:[%s202_s3 + $0x4] sm:$0xf] %vm110_vm1, %v126_v57  ;;  %v93_v60 = vadd.f32 %v120_v43, %v82_v58 }
 0x142   :  { %113 = vst.msk [vmem:[%s202_s3 + $0x8] sm:$0xf] %vm110_vm1, %v127_v59 }
 0x143   :  { %v128_v61 = vpack.c.bf16 %v93_v60, %v93_v60 }
 0x145   :  { %114 = vst.msk [vmem:[%s202_s3 + $0xc] sm:$0xf] %vm110_vm1, %v128_v61 }

// kernel: _lambda_.19
= control target key start
LH: loop header
LB: loop body
LE: loop exit
PB: predicated region body
PF: predicated region fallthrough
CT: control target
= control target key end

     0   :  { %s967_s6 = smov 0   ;;  %s1077_s0 = inlined_call_operand.vmem [shape: bf16[2,16,96], index: 0, kind: input, shape index: {}]   ;;  %s1078_s1 = inlined_call_operand.vmem [shape: bf16[2,16,32], index: 1, kind: output, shape index: {}]  }
   0x1 LB: > { %s764_s7 = sadd.s32 4294967295, %s939_s6   ;;  %p768_p0 = scmp.ge.s32.totalorder %s939_s6, 1  ;;  %s939_s6 = sphi %s967_s6, %s11_s6  }
   0x2   : > { %p87_p1 = scmp.lt.s32.totalorder %s939_s6, 3 }
   0x4   : > { %p88_p2 = pnand %p768_p0, %p87_p1 }
   0x5   : > { %p107_p3 = scmp.lt.s32.totalorder (!%p88_p2), %s764_s7, 1  ;;  %v941_v0 = vmov (!%p88_p2), 0.0   ;;  %vm942_vm0 = vmmov (!%p88_p2), 0   ;;  %s943_s12 = smov (!%p88_p2), 96   ;;  %vm132_vm1 = vcmask (!%p88_p2), 64512   ;;  %vm180_vm2 = vcmask (!%p88_p2), 130048  }
   0x6   : > { %91 = sbr.rel (%p88_p2) target bundleno = 1558 (0x616), region = 24  ;;  %821 = vmatprep.subr.bf16.mxu0 (!%p88_p2), %v941_v0  ;;  %823 = vmatprep.mubr.msk.bf16.mxu0 (!%p88_p2), %vm942_vm0, %v941_v0  ;;  %s944_s13 = smov (!%p88_p2), 64   ;;  %vm259_vm3 = vcmask (!%p88_p2), 60416   ;;  %vm408_vm4 = vcmask (!%p88_p2), 126016   ;;  %vm557_vm5 = vcmask (!%p88_p2), 191616   ;;  %vm706_vm6 = vcmask (!%p88_p2), 257216  }
   0x7   : > { %827 = vmatprep.subr.bf16.mxu1 (!%p88_p2), %v941_v0  ;;  %829 = vmatprep.mubr.msk.bf16.mxu1 (!%p88_p2), %vm942_vm0, %v941_v0  ;;  %s945_s14 = smov (!%p88_p2), 80   ;;  %s946_s15 = smov (!%p88_p2), 88  }
   0x8   : > { %s947_s16 = smov (!%p88_p2), 120   ;;  %s948_s17 = smov (!%p88_p2), 112  }
   0x9   : > { %s949_s18 = smov (!%p88_p2), 72   ;;  %s950_s19 = smov (!%p88_p2), 104  }
   0xa   : > { %s951_s23 = smov (!%p88_p2), 56   ;;  %s952_s24 = smov (!%p88_p2), 40  }
   0xb   : > { %s953_s25 = smov (!%p88_p2), 48   ;;  %s954_s26 = smov (!%p88_p2), 8  }
   0xc   : > { %s955_s27 = smov (!%p88_p2), 16   ;;  %s956_s28 = smov (!%p88_p2), 24  }
   0xd   : > { %s1080_s7 = smov (!%p107_p3, %s764_s7), 1 }
   0xe   : > { %s795_s8 = sshll.u32 %s1080_s7, 3 }
   0xf   : > { %s989_s11 = scalar_lea.vmem %s1077_s0, %s795_s8  ;;  %s1040_s22 = scalar_lea.vmem %s1078_s1, %s795_s8 }
  0x10   : > { %v118_v1 = vld [vmem:[%s989_s11] sm:$0xff]  }
  0x11   : > { %130 = vrot.lane.b32.xlu0 %v118_v1, %s943_s12  ;;  %v121_v2 = vunpack.c.h.bf16 %v118_v1  ;;  %v120_v3 = vunpack.c.l.bf16 %v118_v1  ;;  %v1000_v15 = vld [vmem:[%s989_s11] sm:$0xff]  }
  0x12   : > { %v1007_v27 = vld [vmem:[%s989_s11] sm:$0xff]   ;;  %v413_v30 = vunpack.c.l.bf16 %v1000_v15  ;;  %v414_v31 = vunpack.c.h.bf16 %v1000_v15 }
  0x13   : > { %v123_v5 = vmul.f32 0.35355338, %v121_v2  ;;  %v122_v6 = vmul.f32 0.35355338, %v120_v3  ;;  %v264_v28 = vunpack.c.l.bf16 %v1007_v27  ;;  %v265_v29 = vunpack.c.h.bf16 %v1007_v27  ;;  %v1015_v37 = vld [vmem:[%s989_s11] sm:$0xff]  }
  0x14   : > { %v415_v35 = vmul.f32 0.35355338, %v413_v30  ;;  %v416_v36 = vmul.f32 0.35355338, %v414_v31  ;;  %v562_v39 = vunpack.c.l.bf16 %v1015_v37  ;;  %v563_v40 = vunpack.c.h.bf16 %v1015_v37 }
  0x15   : > { %v124_v8 = vpack.c.bf16 %v123_v5, %v122_v6  ;;  %v266_v32 = vmul.f32 0.35355338, %v264_v28  ;;  %v267_v33 = vmul.f32 0.35355338, %v265_v29 }
  0x16   : > { %v417_v38 = vpack.c.bf16 %v416_v36, %v415_v35  ;;  %v564_v41 = vmul.f32 0.35355338, %v562_v39  ;;  %v565_v42 = vmul.f32 0.35355338, %v563_v40 }
  0x17   : > { %v268_v34 = vpack.c.bf16 %v267_v33, %v266_v32 }
  0x18   : > { %v566_v43 = vpack.c.bf16 %v565_v42, %v564_v41 }
  0x83   : > { %v131_v4 = vpop.permute.xlu0 %130 }
  0x84   : > { %v137_v7 = vsel %vm132_vm1, %v131_v4, 0 }
  0x85   : > { %822 = vmatpush3.bf16.xpose.msra.mxu0 %v137_v7 }
  0x86   : > { %839 = vmatprep.subr.bf16.mxu0 %v941_v0 }
  0x8c   : > { %824 = vmatmul.mubr.msk.bf16.vlgmr.msra.gmra.mrb[0].mxu0 %vm132_vm1, %v124_v8 }
  0x8d   : > { %841 = vmatprep.mubr.msk.bf16.mxu0 %vm942_vm0, %v941_v0 }
 0x15f   : > { %v173_v9 = vpop.f32.mrb[0].mxu0 }
 0x160   : > { %v825_v10 = vpop.f32.mrb[1].mxu0  ;;  %v181_v11 = vsel %vm180_vm2, %v173_v9, -inf }
 0x161   : > { %182 = vmax.xlane.f32.xlu0 %v181_v11  ;;  %v176_v12 = vpop.f32.mrb[2].mxu0 }
 0x162   : > { %v826_v13 = vpop.f32.mrb[3].mxu0  ;;  %v184_v14 = vsel %vm180_vm2, %v176_v12, -inf }
 0x163   : > { %185 = vmax.xlane.f32.xlu1 %v184_v14 }
 0x174   : > { %204 = vrot.lane.b32.xlu1 %v118_v1, %s944_s13 }
 0x177   : > { %426 = vrot.lane.b32.xlu0 %v1000_v15, %s945_s14 }
 0x1ee   : > { %v183_v16 = vpop.xlane.xlu0 %182 }
 0x1ef   : > { %v187_v17 = vsub.f32 %v173_v9, %v183_v16 }
 0x1f0   : > { %v186_v18 = vpop.xlane.xlu1 %185 }
 0x1f1   : > { %v189_v19 = vmul.f32 1.442695, %v187_v17  ;;  %v188_v20 = vsub.f32 %v176_v12, %v186_v18 }
 0x1f2   : > { %v427_v54 = vpop.permute.xlu0 %426 }
 0x1f3   : > { %901 = vpow2.f32 %v189_v19  ;;  %v191_v21 = vmul.f32 1.442695, %v188_v20  ;;  %v432_v56 = vsel %vm132_vm1, %v427_v54, 0 }
 0x1f4   : > { %v205_v22 = vpop.permute.xlu1 %204 }
 0x1f5   : > { %903 = vpow2.f32 %v191_v21  ;;  %828 = vmatpush3.bf16.msra.mxu1 %v205_v22 }
 0x1f6   : > { %833 = vmatprep.subr.bf16.mxu1 %v941_v0 }
 0x1fd   : > { %v902_v23 = vpop.eup %901 }
 0x1fe   : > { %v193_v24 = vsel %vm180_vm2, %v902_v23, 0.0 }
 0x1ff   : > { %v904_v25 = vpop.eup %903  ;;  %194 = vadd.xlane.f32.xlu1 %v193_v24 }
 0x200   : > { %v196_v26 = vsel %vm180_vm2, %v904_v25, 0.0 }
 0x203   : > { %197 = vadd.xlane.f32.xlu1 %v196_v26 }
 0x214   : > { %277 = vrot.lane.b32.xlu1 %v1007_v27, %s946_s15 }
 0x218   : > { %270 = vrot.lane.b32.xlu1 %v268_v34, %s947_s16 }
 0x21c   : > { %419 = vrot.lane.b32.xlu1 %v417_v38, %s948_s17 }
 0x220   : > { %575 = vrot.lane.b32.xlu1 %v1015_v37, %s949_s18 }
 0x224   : > { %568 = vrot.lane.b32.xlu1 %v566_v43, %s950_s19 }
 0x28c   : > { %v195_v44 = vpop.xlane.xlu1 %194 }
 0x28d   : > { %905 = vrcp.f32 %v195_v44 }
 0x290   : > { %v198_v45 = vpop.xlane.xlu1 %197 }
 0x291   : > { %907 = vrcp.f32 %v198_v45 }
 0x294   : > { %v278_v48 = vpop.permute.xlu1 %277 }
 0x295   : > { %v283_v51 = vsel %vm132_vm1, %v278_v48, 0 }
 0x297   : > { %v906_v46 = vpop.eup %905 }
 0x298   : > { %v201_v49 = vmul.f32 %v906_v46, %v902_v23  ;;  %v271_v53 = vpop.permute.xlu1 %270 }
 0x29b   : > { %v908_v47 = vpop.eup %907 }
 0x29c   : > { %v202_v50 = vmul.f32 %v908_v47, %v904_v25  ;;  %v420_v55 = vpop.permute.xlu1 %419 }
 0x29e   : > { %v203_v52 = vpack.c.bf16 %v202_v50, %v201_v49 }
 0x2a0   : > { %830 = vmatmul.mubr.msk.bf16.vlgmr.msra.gmra.mrb[0].mxu1 %vm180_vm2, %v203_v52  ;;  %v576_v57 = vpop.permute.xlu1 %575 }
 0x2a1   : > { %834 = vmatpush3.bf16.xpose.msra.mxu1 %v283_v51  ;;  %835 = vmatprep.mubr.msk.bf16.mxu1 %vm942_vm0, %v941_v0  ;;  %v581_v58 = vsel %vm132_vm1, %v576_v57, 0 }
 0x2a2   : > { %845 = vmatprep.subr.bf16.mxu1 %v941_v0 }
 0x2a4   : > { %v569_v59 = vpop.permute.xlu1 %568 }
 0x2a8   : > { %836 = vmatmul.mubr.msk.bf16.vlgmr.msra.gmra.mrb[4].mxu1 %vm132_vm1, %v271_v53 }
 0x2a9   : > { %846 = vmatpush3.bf16.xpose.msra.mxu1 %v432_v56  ;;  %847 = vmatprep.mubr.msk.bf16.mxu1 %vm942_vm0, %v941_v0 }
 0x2aa   : > { %857 = vmatprep.subr.bf16.mxu1 %v941_v0 }
 0x2b0   : > { %848 = vmatmul.mubr.msk.bf16.vlgmr.msra.gmra.mrb[8].mxu1 %vm132_vm1, %v420_v55 }
 0x2b1   : > { %858 = vmatpush3.bf16.xpose.msra.mxu1 %v581_v58  ;;  %859 = vmatprep.mubr.msk.bf16.mxu1 %vm942_vm0, %v941_v0 }
 0x2b8   : > { %860 = vmatmul.mubr.msk.bf16.vlgmr.msra.gmra.mrb[12].mxu1 %vm132_vm1, %v569_v59 }
 0x373   : > { %v244_v60 = vpop.f32.mrb[0].mxu1 }
 0x374   : > { %v797_v61 = vpack.c.bf16 %v244_v60, %v244_v60  ;;  %v831_v62 = vpop.f32.mrb[1].mxu1 }
 0x375   : > { %v247_v63 = vpop.f32.mrb[2].mxu1 }
 0x376   : > { %260 = vst.msk [vmem:[%s1040_s22] sm:$0xf] %vm259_vm3, %v797_v61  ;;  %v798_v1 = vpack.c.bf16 %v247_v63, %v247_v63  ;;  %v832_v2 = vpop.f32.mrb[3].mxu1 }
 0x378   : > { %261 = vst.msk [vmem:[%s1040_s22 + $0x4] sm:$0xf] %vm259_vm3, %v798_v1 }
 0x37b   : > { %v319_v3 = vpop.f32.mrb[4].mxu1 }
 0x37c   : > { %v837_v4 = vpop.f32.mrb[5].mxu1  ;;  %v326_v5 = vsel %vm180_vm2, %v319_v3, -inf }
 0x37d   : > { %327 = vmax.xlane.f32.xlu1 %v326_v5  ;;  %v322_v6 = vpop.f32.mrb[6].mxu1 }
 0x37e   : > { %v838_v7 = vpop.f32.mrb[7].mxu1  ;;  %v329_v8 = vsel %vm180_vm2, %v322_v6, -inf }
 0x37f   : > { %330 = vmax.xlane.f32.xlu0 %v329_v8 }
 0x383   : > { %v468_v9 = vpop.f32.mrb[8].mxu1 }
 0x384   : > { %v849_v10 = vpop.f32.mrb[9].mxu1  ;;  %v475_v11 = vsel %vm180_vm2, %v468_v9, -inf }
 0x385   : > { %476 = vmax.xlane.f32.xlu1 %v475_v11  ;;  %v471_v12 = vpop.f32.mrb[10].mxu1 }
 0x386   : > { %v850_v13 = vpop.f32.mrb[11].mxu1  ;;  %v478_v14 = vsel %vm180_vm2, %v471_v12, -inf }
 0x387   : > { %479 = vmax.xlane.f32.xlu0 %v478_v14 }
 0x38b   : > { %v617_v16 = vpop.f32.mrb[12].mxu1 }
 0x38c   : > { %v861_v17 = vpop.f32.mrb[13].mxu1  ;;  %v624_v18 = vsel %vm180_vm2, %v617_v16, -inf }
 0x38d   : > { %625 = vmax.xlane.f32.xlu1 %v624_v18  ;;  %v620_v19 = vpop.f32.mrb[14].mxu1 }
 0x38e   : > { %v862_v20 = vpop.f32.mrb[15].mxu1  ;;  %v627_v21 = vsel %vm180_vm2, %v620_v19, -inf }
 0x38f   : > { %628 = vmax.xlane.f32.xlu0 %v627_v21 }
 0x39e   : > { %349 = vrot.lane.b32.xlu1 %v1007_v27, %s951_s23 }
 0x40a   : > { %v328_v22 = vpop.xlane.xlu1 %327 }
 0x40b   : > { %v332_v23 = vsub.f32 %v319_v3, %v328_v22 }
 0x40c   : > { %v331_v24 = vpop.xlane.xlu0 %330 }
 0x40d   : > { %v334_v25 = vmul.f32 1.442695, %v332_v23  ;;  %v333_v26 = vsub.f32 %v322_v6, %v331_v24 }
 0x40f   : > { %909 = vpow2.f32 %v334_v25  ;;  %v336_v28 = vmul.f32 1.442695, %v333_v26 }
 0x411   : > { %911 = vpow2.f32 %v336_v28 }
 0x412   : > { %v477_v29 = vpop.xlane.xlu1 %476 }
 0x413   : > { %v481_v30 = vsub.f32 %v468_v9, %v477_v29 }
 0x414   : > { %v480_v31 = vpop.xlane.xlu0 %479 }
 0x415   : > { %v483_v32 = vmul.f32 1.442695, %v481_v30  ;;  %v482_v33 = vsub.f32 %v471_v12, %v480_v31 }
 0x417   : > { %913 = vpow2.f32 %v483_v32  ;;  %v485_v34 = vmul.f32 1.442695, %v482_v33 }
 0x419   : > { %v910_v35 = vpop.eup %909  ;;  %915 = vpow2.f32 %v485_v34 }
 0x41a   : > { %v626_v36 = vpop.xlane.xlu1 %625  ;;  %v338_v27 = vsel %vm180_vm2, %v910_v35, 0.0 }
 0x41b   : > { %v912_v38 = vpop.eup %911  ;;  %v630_v39 = vsub.f32 %v617_v16, %v626_v36  ;;  %339 = vadd.xlane.f32.xlu1 %v338_v27 }
 0x41c   : > { %v629_v40 = vpop.xlane.xlu0 %628  ;;  %v341_v41 = vsel %vm180_vm2, %v912_v38, 0.0 }
 0x41d   : > { %v632_v42 = vmul.f32 1.442695, %v630_v39  ;;  %v631_v43 = vsub.f32 %v620_v19, %v629_v40  ;;  %342 = vadd.xlane.f32.xlu0 %v341_v41 }
 0x41e   : > { %v350_v44 = vpop.permute.xlu1 %349 }
 0x41f   : > { %917 = vpow2.f32 %v632_v42  ;;  %v634_v45 = vmul.f32 1.442695, %v631_v43  ;;  %840 = vmatpush3.bf16.msra.mxu0 %v350_v44 }
 0x420   : > { %851 = vmatprep.subr.bf16.mxu0 %v941_v0 }
 0x421   : > { %v914_v46 = vpop.eup %913  ;;  %919 = vpow2.f32 %v634_v45 }
 0x422   : > { %v487_v47 = vsel %vm180_vm2, %v914_v46, 0.0 }
 0x423   : > { %v916_v48 = vpop.eup %915  ;;  %488 = vadd.xlane.f32.xlu1 %v487_v47 }
 0x424   : > { %v490_v49 = vsel %vm180_vm2, %v916_v48, 0.0 }
 0x425   : > { %491 = vadd.xlane.f32.xlu0 %v490_v49 }
 0x429   : > { %v918_v50 = vpop.eup %917 }
 0x42a   : > { %v636_v51 = vsel %vm180_vm2, %v918_v50, 0.0 }
 0x42b   : > { %v920_v52 = vpop.eup %919  ;;  %637 = vadd.xlane.f32.xlu1 %v636_v51 }
 0x42c   : > { %v639_v53 = vsel %vm180_vm2, %v920_v52, 0.0 }
 0x42d   : > { %640 = vadd.xlane.f32.xlu0 %v639_v53 }
 0x43c   : > { %647 = vrot.lane.b32.xlu1 %v1015_v37, %s952_s24 }
 0x443   : > { %498 = vrot.lane.b32.xlu0 %v1000_v15, %s953_s25 }
 0x4a8   : > { %v340_v54 = vpop.xlane.xlu1 %339 }
 0x4a9   : > { %921 = vrcp.f32 %v340_v54 }
 0x4aa   : > { %v343_v55 = vpop.xlane.xlu0 %342 }
 0x4ab   : > { %923 = vrcp.f32 %v343_v55 }
 0x4b0   : > { %v489_v56 = vpop.xlane.xlu1 %488 }
 0x4b1   : > { %925 = vrcp.f32 %v489_v56 }
 0x4b2   : > { %v492_v57 = vpop.xlane.xlu0 %491 }
 0x4b3   : > { %v922_v58 = vpop.eup %921  ;;  %927 = vrcp.f32 %v492_v57 }
 0x4b4   : > { %v346_v60 = vmul.f32 %v922_v58, %v910_v35 }
 0x4b5   : > { %v924_v59 = vpop.eup %923 }
 0x4b6   : > { %v347_v61 = vmul.f32 %v924_v59, %v912_v38 }
 0x4b8   : > { %v638_v62 = vpop.xlane.xlu1 %637  ;;  %v348_v63 = vpack.c.bf16 %v347_v61, %v346_v60 }
 0x4b9   : > { %929 = vrcp.f32 %v638_v62 }
 0x4ba   : > { %v641_v1 = vpop.xlane.xlu0 %640  ;;  %842 = vmatmul.mubr.msk.bf16.vlgmr.msra.gmra.mrb[4].mxu0 %vm180_vm2, %v348_v63 }
 0x4bb   : > { %v926_v37 = vpop.eup %925  ;;  %931 = vrcp.f32 %v641_v1  ;;  %853 = vmatprep.mubr.msk.bf16.mxu0 %vm942_vm0, %v941_v0 }
 0x4bc   : > { %v495_v2 = vmul.f32 %v926_v37, %v914_v46  ;;  %v648_v6 = vpop.permute.xlu1 %647 }
 0x4bd   : > { %v928_v15 = vpop.eup %927 }
 0x4be   : > { %v496_v3 = vmul.f32 %v928_v15, %v916_v48  ;;  %v499_v4 = vpop.permute.xlu0 %498 }
 0x4bf   : > { %852 = vmatpush3.bf16.msra.mxu0 %v499_v4 }
 0x4c0   : > { %v497_v5 = vpack.c.bf16 %v496_v3, %v495_v2  ;;  %863 = vmatprep.subr.bf16.mxu0 %v941_v0 }
 0x4c2   : > { %854 = vmatmul.mubr.msk.bf16.vlgmr.msra.gmra.mrb[8].mxu0 %vm180_vm2, %v497_v5 }
 0x4c3   : > { %v930_v7 = vpop.eup %929  ;;  %864 = vmatpush3.bf16.msra.mxu0 %v648_v6  ;;  %865 = vmatprep.mubr.msk.bf16.mxu0 %vm942_vm0, %v941_v0 }
 0x4c4   : > { %v644_v9 = vmul.f32 %v930_v7, %v918_v50 }
 0x4c5   : > { %v932_v8 = vpop.eup %931 }
 0x4c6   : > { %v645_v10 = vmul.f32 %v932_v8, %v920_v52 }
 0x4c8   : > { %v646_v11 = vpack.c.bf16 %v645_v10, %v644_v9 }
 0x4ca   : > { %866 = vmatmul.mubr.msk.bf16.vlgmr.msra.gmra.mrb[12].mxu0 %vm180_vm2, %v646_v11 }
 0x58d   : > { %v389_v12 = vpop.f32.mrb[4].mxu0 }
 0x58e   : > { %v799_v13 = vpack.c.bf16 %v389_v12, %v389_v12  ;;  %v843_v14 = vpop.f32.mrb[5].mxu0 }
 0x58f   : > { %v392_v16 = vpop.f32.mrb[6].mxu0 }
 0x590   : > { %v800_v17 = vpack.c.bf16 %v392_v16, %v392_v16  ;;  %402 = vrot.lane.b32.xlu1 %v799_v13, %s954_s26  ;;  %v844_v18 = vpop.f32.mrb[7].mxu0 }
 0x592   : > { %404 = vrot.lane.b32.xlu0 %v800_v17, %s954_s26 }
 0x595   : > { %v538_v19 = vpop.f32.mrb[8].mxu0 }
 0x596   : > { %v801_v20 = vpack.c.bf16 %v538_v19, %v538_v19  ;;  %v855_v21 = vpop.f32.mrb[9].mxu0 }
 0x597   : > { %v541_v22 = vpop.f32.mrb[10].mxu0 }
 0x598   : > { %v802_v0 = vpack.c.bf16 %v541_v22, %v541_v22  ;;  %551 = vrot.lane.b32.xlu1 %v801_v20, %s955_s27  ;;  %v856_v23 = vpop.f32.mrb[11].mxu0 }
 0x59a   : > { %553 = vrot.lane.b32.xlu0 %v802_v0, %s955_s27 }
 0x59d   : > { %v687_v24 = vpop.f32.mrb[12].mxu0 }
 0x59e   : > { %v803_v25 = vpack.c.bf16 %v687_v24, %v687_v24  ;;  %v867_v26 = vpop.f32.mrb[13].mxu0 }
 0x59f   : > { %v690_v28 = vpop.f32.mrb[14].mxu0 }
 0x5a0   : > { %v804_v29 = vpack.c.bf16 %v690_v28, %v690_v28  ;;  %700 = vrot.lane.b32.xlu1 %v803_v25, %s956_s28  ;;  %v868_v30 = vpop.f32.mrb[15].mxu0 }
 0x5a2   : > { %702 = vrot.lane.b32.xlu0 %v804_v29, %s956_s28 }
 0x602   : > { %v403_v31 = vpop.permute.xlu1 %402 }
 0x603   : > { %409 = vst.msk [vmem:[%s1040_s22] sm:$0xf] %vm408_vm4, %v403_v31 }
 0x604   : > { %v405_v32 = vpop.permute.xlu0 %404 }
 0x605   : > { %410 = vst.msk [vmem:[%s1040_s22 + $0x4] sm:$0xf] %vm408_vm4, %v405_v32 }
 0x60a   : > { %v552_v33 = vpop.permute.xlu1 %551 }
 0x60b   : > { %558 = vst.msk [vmem:[%s1040_s22] sm:$0xf] %vm557_vm5, %v552_v33 }
 0x60c   : > { %v554_v34 = vpop.permute.xlu0 %553 }
 0x60d   : > { %559 = vst.msk [vmem:[%s1040_s22 + $0x4] sm:$0xf] %vm557_vm5, %v554_v34 }
 0x612   : > { %v701_v35 = vpop.permute.xlu1 %700 }
 0x613   : > { %707 = vst.msk [vmem:[%s1040_s22] sm:$0xf] %vm706_vm6, %v701_v35 }
 0x614   : > { %v703_v36 = vpop.permute.xlu0 %702 }
 0x615   : > { %708 = vst.msk [vmem:[%s1040_s22 + $0x4] sm:$0xf] %vm706_vm6, %v703_v36 }
 0x616 PF: > { %s11_s6 = sadd.s32 1, %s939_s6  }
 0x617   : > { %p8_p4 = scmp.ge.s32.totalorder %s11_s6, 4  }
 0x619   :  { %10 = sbr.rel (!%p8_p4) target bundleno = 1 (0x1), region = 54 }

// kernel: _lambda_.20
= control target key start
LH: loop header
LB: loop body
LE: loop exit
PB: predicated region body
PF: predicated region fallthrough
CT: control target
= control target key end

     0   :  { %vm22_vm0 = vcmask 261120   ;;  %v183_v1 = vmov 0.0   ;;  %s262_s1 = inlined_call_operand.vmem [shape: bf16[32,32], index: 1, kind: input, shape index: {}]   ;;  %s263_s0 = inlined_call_operand.vmem [shape: bf16[32,32], index: 0, kind: input, shape index: {}]   ;;  %s264_s2 = inlined_call_operand.vmem [shape: f32[1,32], index: 2, kind: input, shape index: {}]   ;;  %s265_s3 = inlined_call_operand.vmem [shape: f32[32,32], index: 3, kind: input, shape index: {}, may-alias: {3,4}]   ;;  %s266_s4 = inlined_call_operand.vmem [shape: f32[32,32], index: 4, kind: output, shape index: {}, may-alias: {3,4}]  }
   0x1   :  { %v179_v0 = vld [vmem:[%s262_s1] sm:$0xff]   ;;  %25 = vst.msk [vmem:[#allocation2 + $0x10] sm:$0xff] %vm22_vm0, %v183_v1  ;;  %23 = vst.msk [vmem:[#allocation2] sm:$0xff] %vm22_vm0, %v183_v1  ;;  %v180_v2 = vld [vmem:[%s262_s1 + $0x8] sm:$0xff]  }
   0x2   :  { %24 = vst.msk [vmem:[#allocation2 + $0x8] sm:$0xff] %vm22_vm0, %v183_v1  ;;  %26 = vst.msk [vmem:[#allocation2 + $0x18] sm:$0xff] %vm22_vm0, %v183_v1  ;;  %170 = vmatprep.subr.bf16.mxu0 %v179_v0  ;;  %v181_v3 = vld [vmem:[%s263_s0] sm:$0xff]   ;;  %v182_v4 = vld [vmem:[%s263_s0 + $0x8] sm:$0xff]  }
   0x3   :  { %171 = vmatpush3.bf16.msra.mxu0 %v179_v0  ;;  %174 = vmatprep.mubr.msk.bf16.mxu0 %vm22_vm0, %v181_v3  ;;  %v165_v17 = vld [vmem:[%s264_s2] ss:$0 sm:$0xff]  ;;  %v145_v19 = vld [vmem:[%s265_s3 + $0x10] sm:$0xff]  ;;  %v146_v25 = vld [vmem:[%s265_s3 + $0x18] sm:$0xff] }
   0x4   :  { %172 = vmatprep.subr.bf16.mxu0 %v180_v2  ;;  %v143_v22 = vld [vmem:[%s265_s3] sm:$0xff]  ;;  %v144_v29 = vld [vmem:[%s265_s3 + $0x8] sm:$0xff] }
   0x7   :  { %173 = vmatpush3.bf16.msra.mxu0 %v180_v2 }
   0x8   :  { %v29_v5 = vld [vmem:[#allocation2 + $0x10] sm:$0xff]  ;;  %v27_v6 = vld [vmem:[#allocation2] sm:$0xff] }
   0x9   :  { %v30_v8 = vld [vmem:[#allocation2 + $0x18] sm:$0xff]  ;;  %v28_v11 = vld [vmem:[#allocation2 + $0x8] sm:$0xff] }
   0xa   :  { %175 = vmatmul.mubr.msk.bf16.vlgmr.msra.gmra.mrb[0].mxu0 %vm22_vm0, %v182_v4 }
  0xdd   :  { %v176_v7 = vpop.f32.mrb[0].mxu0 }
  0xde   :  { %v119_v9 = vadd.f32 %v176_v7, %v29_v5  ;;  %v102_v10 = vpop.f32.mrb[1].mxu0 }
  0xdf   :  { %v117_v12 = vadd.f32 %v102_v10, %v27_v6  ;;  %v177_v13 = vpop.f32.mrb[2].mxu0 }
  0xe0   :  { %123 = vst.msk [vmem:[#allocation2 + $0x10] sm:$0xff] %vm22_vm0, %v119_v9  ;;  %v120_v14 = vadd.f32 %v177_v13, %v30_v8  ;;  %v105_v15 = vpop.f32.mrb[3].mxu0 }
  0xe1   :  { %121 = vst.msk [vmem:[#allocation2] sm:$0xff] %vm22_vm0, %v117_v12  ;;  %v118_v16 = vadd.f32 %v105_v15, %v28_v11 }
  0xe2   :  { %124 = vst.msk [vmem:[#allocation2 + $0x18] sm:$0xff] %vm22_vm0, %v120_v14 }
  0xe3   :  { %122 = vst.msk [vmem:[#allocation2 + $0x8] sm:$0xff] %vm22_vm0, %v118_v16 }
  0xe7   :  { %v130_v18 = vld [vmem:[#allocation2 + $0x10] sm:$0xff] }
  0xe8   :  { %v141_v20 = vadd.f32 %v165_v17, %v130_v18  ;;  %v128_v21 = vld [vmem:[#allocation2] sm:$0xff] }
  0xe9   :  { %v139_v23 = vadd.f32 %v165_v17, %v128_v21  ;;  %v131_v24 = vld [vmem:[#allocation2 + $0x18] sm:$0xff] }
  0xea   :  { %v149_v26 = vadd.f32 %v145_v19, %v141_v20  ;;  %v142_v27 = vadd.f32 %v165_v17, %v131_v24  ;;  %v129_v28 = vld [vmem:[#allocation2 + $0x8] sm:$0xff] }
  0xeb   :  { %v147_v30 = vadd.f32 %v143_v22, %v139_v23  ;;  %v140_v31 = vadd.f32 %v165_v17, %v129_v28 }
  0xec   :  { %153 = vst.msk [vmem:[%s266_s4 + $0x10] sm:$0xff] %vm22_vm0, %v149_v26  ;;  %v150_v32 = vadd.f32 %v146_v25, %v142_v27 }
  0xed   :  { %151 = vst.msk [vmem:[%s266_s4] sm:$0xff] %vm22_vm0, %v147_v30  ;;  %v148_v33 = vadd.f32 %v144_v29, %v140_v31 }
  0xee   :  { %154 = vst.msk [vmem:[%s266_s4 + $0x18] sm:$0xff] %vm22_vm0, %v150_v32 }
  0xef   :  { %152 = vst.msk [vmem:[%s266_s4 + $0x8] sm:$0xff] %vm22_vm0, %v148_v33 }

// kernel: _lambda_.22
= control target key start
LH: loop header
LB: loop body
LE: loop exit
PB: predicated region body
PF: predicated region fallthrough
CT: control target
= control target key end

     0   :  { %vm19_vm0 = vcmask 523264   ;;  %v242_v1 = vmov 0.0   ;;  %vm58_vm1 = vcmask 261120   ;;  %vm193_vm2 = vcmask 519168   ;;  %s298_s1 = inlined_call_operand.vmem [shape: bf16[32,64], index: 1, kind: input, shape index: {}]   ;;  %s299_s0 = inlined_call_operand.vmem [shape: bf16[32,32], index: 0, kind: input, shape index: {}]   ;;  %s300_s2 = inlined_call_operand.vmem [shape: f32[1,64], index: 2, kind: input, shape index: {}]   ;;  %s301_s3 = inlined_call_operand.vmem [shape: bf16[32,64], index: 3, kind: output, shape index: {}]  }
   0x1   :  { %v230_v0 = vld [vmem:[%s298_s1] sm:$0xff]   ;;  %22 = vst.msk [vmem:[#allocation2 + $0x10] sm:$0xff] %vm19_vm0, %v242_v1  ;;  %20 = vst.msk [vmem:[#allocation2] sm:$0xff] %vm19_vm0, %v242_v1  ;;  %v231_v2 = vld [vmem:[%s298_s1 + $0x8] sm:$0xff]  }
   0x2   :  { %21 = vst.msk [vmem:[#allocation2 + $0x8] sm:$0xff] %vm19_vm0, %v242_v1  ;;  %23 = vst.msk [vmem:[#allocation2 + $0x18] sm:$0xff] %vm19_vm0, %v242_v1  ;;  %221 = vmatprep.subr.bf16.mxu0 %v230_v0  ;;  %v232_v3 = vld [vmem:[%s299_s0] sm:$0xff]   ;;  %v233_v4 = vld [vmem:[%s299_s0 + $0x8] sm:$0xff]  }
   0x3   :  { %222 = vmatpush3.bf16.msra.mxu0 %v230_v0  ;;  %225 = vmatprep.mubr.msk.bf16.mxu0 %vm58_vm1, %v232_v3  ;;  %v208_v17 = vld [vmem:[%s300_s2] ss:$0 sm:$0xff] }
   0x4   :  { %223 = vmatprep.subr.bf16.mxu0 %v231_v2 }
   0x7   :  { %224 = vmatpush3.bf16.msra.mxu0 %v231_v2 }
   0x8   :  { %v26_v5 = vld [vmem:[#allocation2 + $0x10] sm:$0xff]  ;;  %v24_v6 = vld [vmem:[#allocation2] sm:$0xff] }
   0x9   :  { %v27_v8 = vld [vmem:[#allocation2 + $0x18] sm:$0xff]  ;;  %v25_v11 = vld [vmem:[#allocation2 + $0x8] sm:$0xff] }
   0xa   :  { %226 = vmatmul.mubr.msk.bf16.vlgmr.msra.gmra.mrb[0].mxu0 %vm58_vm1, %v233_v4 }
  0xdd   :  { %v227_v7 = vpop.f32.mrb[0].mxu0 }
  0xde   :  { %v116_v9 = vadd.f32 %v227_v7, %v26_v5  ;;  %v99_v10 = vpop.f32.mrb[1].mxu0 }
  0xdf   :  { %v114_v12 = vadd.f32 %v99_v10, %v24_v6  ;;  %v228_v13 = vpop.f32.mrb[2].mxu0 }
  0xe0   :  { %121 = vst.msk [vmem:[#allocation2 + $0x10] sm:$0xff] %vm19_vm0, %v116_v9  ;;  %v117_v14 = vadd.f32 %v228_v13, %v27_v8  ;;  %v102_v15 = vpop.f32.mrb[3].mxu0 }
  0xe1   :  { %119 = vst.msk [vmem:[#allocation2] sm:$0xff] %vm19_vm0, %v114_v12  ;;  %v115_v16 = vadd.f32 %v102_v15, %v25_v11 }
  0xe2   :  { %122 = vst.msk [vmem:[#allocation2 + $0x18] sm:$0xff] %vm19_vm0, %v117_v14 }
  0xe3   :  { %120 = vst.msk [vmem:[#allocation2 + $0x8] sm:$0xff] %vm19_vm0, %v115_v16 }
  0xe7   :  { %v128_v18 = vld [vmem:[#allocation2 + $0x10] sm:$0xff] }
  0xe8   :  { %v139_v19 = vadd.f32 %v208_v17, %v128_v18  ;;  %v126_v20 = vld [vmem:[#allocation2] sm:$0xff] }
  0xe9   :  { %v137_v21 = vadd.f32 %v208_v17, %v126_v20  ;;  %v129_v22 = vld [vmem:[#allocation2 + $0x18] sm:$0xff] }
  0xea   :  { %v147_v23 = vmul.f32 0.044715, %v139_v19  ;;  %v140_v24 = vadd.f32 %v208_v17, %v129_v22  ;;  %v127_v25 = vld [vmem:[#allocation2 + $0x8] sm:$0xff]  ;;  %v143_v48 = vmul.f32 0.5, %v139_v19 }
  0xeb   :  { %v145_v26 = vmul.f32 0.044715, %v137_v21  ;;  %v138_v27 = vadd.f32 %v208_v17, %v127_v25  ;;  %v141_v51 = vmul.f32 0.5, %v137_v21 }
  0xec   :  { %v151_v28 = vmul.f32 %v147_v23, %v139_v19  ;;  %v148_v29 = vmul.f32 0.044715, %v140_v24  ;;  %v144_v55 = vmul.f32 0.5, %v140_v24 }
  0xed   :  { %v149_v30 = vmul.f32 %v145_v26, %v137_v21  ;;  %v146_v31 = vmul.f32 0.044715, %v138_v27  ;;  %v142_v58 = vmul.f32 0.5, %v138_v27 }
  0xee   :  { %v155_v32 = vmul.f32 %v151_v28, %v139_v19  ;;  %v152_v33 = vmul.f32 %v148_v29, %v140_v24 }
  0xef   :  { %v153_v34 = vmul.f32 %v149_v30, %v137_v21  ;;  %v150_v35 = vmul.f32 %v146_v31, %v138_v27 }
  0xf0   :  { %v159_v36 = vadd.f32 %v155_v32, %v139_v19  ;;  %v156_v37 = vmul.f32 %v152_v33, %v140_v24 }
  0xf1   :  { %v157_v38 = vadd.f32 %v153_v34, %v137_v21  ;;  %v154_v39 = vmul.f32 %v150_v35, %v138_v27 }
  0xf2   :  { %v163_v40 = vmul.f32 0.7978846, %v159_v36  ;;  %v160_v41 = vadd.f32 %v156_v37, %v140_v24 }
  0xf3   :  { %v161_v42 = vmul.f32 0.7978846, %v157_v38  ;;  %v158_v43 = vadd.f32 %v154_v39, %v138_v27 }
  0xf4   :  { %234 = vtanh.f32 %v163_v40  ;;  %v164_v44 = vmul.f32 0.7978846, %v160_v41 }
  0xf5   :  { %236 = vtanh.f32 %v161_v42  ;;  %v162_v45 = vmul.f32 0.7978846, %v158_v43 }
  0xf6   :  { %238 = vtanh.f32 %v164_v44 }
  0xf7   :  { %240 = vtanh.f32 %v162_v45 }
  0xfe   :  { %v235_v46 = vpop.eup %234 }
  0xff   :  { %v237_v47 = vpop.eup %236  ;;  %v171_v49 = vadd.f32 1.0, %v235_v46 }
 0x100   :  { %v239_v50 = vpop.eup %238  ;;  %v169_v52 = vadd.f32 1.0, %v237_v47 }
 0x101   :  { %v241_v53 = vpop.eup %240  ;;  %v175_v54 = vmul.f32 %v171_v49, %v143_v48  ;;  %v172_v56 = vadd.f32 1.0, %v239_v50 }
 0x102   :  { %v173_v57 = vmul.f32 %v169_v52, %v141_v51  ;;  %v170_v59 = vadd.f32 1.0, %v241_v53 }
 0x103   :  { %v215_v60 = vpack.c.bf16 %v175_v54, %v175_v54  ;;  %v176_v61 = vmul.f32 %v172_v56, %v144_v55 }
 0x104   :  { %v213_v62 = vpack.c.bf16 %v173_v57, %v173_v57  ;;  %v174_v63 = vmul.f32 %v170_v59, %v142_v58 }
 0x105   :  { %196 = vst.msk [vmem:[%s301_s3 + $0x8] sm:$0xf] %vm193_vm2, %v215_v60  ;;  %v216_v0 = vpack.c.bf16 %v176_v61, %v176_v61 }
 0x106   :  { %194 = vst.msk [vmem:[%s301_s3] sm:$0xf] %vm193_vm2, %v213_v62  ;;  %v214_v1 = vpack.c.bf16 %v174_v63, %v174_v63 }
 0x107   :  { %197 = vst.msk [vmem:[%s301_s3 + $0xc] sm:$0xf] %vm193_vm2, %v216_v0 }
 0x108   :  { %195 = vst.msk [vmem:[%s301_s3 + $0x4] sm:$0xf] %vm193_vm2, %v214_v1 }

// kernel: _lambda_.23
= control target key start
LH: loop header
LB: loop body
LE: loop exit
PB: predicated region body
PF: predicated region fallthrough
CT: control target
= control target key end

     0   :  { %vm22_vm0 = vcmask 261120   ;;  %v210_v1 = vmov 0.0   ;;  %vm77_vm1 = vcmask 523264   ;;  %s293_s1 = inlined_call_operand.vmem [shape: bf16[64,32], index: 1, kind: input, shape index: {}]   ;;  %s294_s0 = inlined_call_operand.vmem [shape: bf16[32,64], index: 0, kind: input, shape index: {}]   ;;  %s295_s2 = inlined_call_operand.vmem [shape: f32[1,32], index: 2, kind: input, shape index: {}]   ;;  %s296_s3 = inlined_call_operand.vmem [shape: f32[32,32], index: 3, kind: input, shape index: {}, may-alias: {3,4}]   ;;  %s297_s4 = inlined_call_operand.vmem [shape: f32[32,32], index: 4, kind: output, shape index: {}, may-alias: {3,4}]  }
   0x1   :  { %v204_v0 = vld [vmem:[%s293_s1] sm:$0xff]   ;;  %25 = vst.msk [vmem:[#allocation2 + $0x10] sm:$0xff] %vm22_vm0, %v210_v1  ;;  %23 = vst.msk [vmem:[#allocation2] sm:$0xff] %vm22_vm0, %v210_v1  ;;  %v205_v2 = vld [vmem:[%s293_s1 + $0x8] sm:$0xff]  }
   0x2   :  { %24 = vst.msk [vmem:[#allocation2 + $0x8] sm:$0xff] %vm22_vm0, %v210_v1  ;;  %26 = vst.msk [vmem:[#allocation2 + $0x18] sm:$0xff] %vm22_vm0, %v210_v1  ;;  %191 = vmatprep.subr.bf16.mxu0 %v204_v0  ;;  %v206_v3 = vld [vmem:[%s293_s1 + $0x10] sm:$0xff]   ;;  %v208_v4 = vld [vmem:[%s294_s0] sm:$0xff]  }
   0x3   :  { %192 = vmatpush3.bf16.msra.mxu0 %v204_v0  ;;  %199 = vmatprep.mubr.msk.bf16.mxu0 %vm77_vm1, %v208_v4  ;;  %v207_v5 = vld [vmem:[%s293_s1 + $0x18] sm:$0xff]   ;;  %v209_v6 = vld [vmem:[%s294_s0 + $0x8] sm:$0xff]   ;;  %v184_v19 = vld [vmem:[%s295_s2] ss:$0 sm:$0xff] }
   0x4   :  { %193 = vmatprep.subr.bf16.mxu0 %v205_v2  ;;  %v162_v21 = vld [vmem:[%s296_s3 + $0x10] sm:$0xff]  ;;  %v160_v24 = vld [vmem:[%s296_s3] sm:$0xff]  ;;  %v163_v27 = vld [vmem:[%s296_s3 + $0x18] sm:$0xff] }
   0x5   :  { %v161_v31 = vld [vmem:[%s296_s3 + $0x8] sm:$0xff] }
   0x7   :  { %194 = vmatpush3.bf16.msra.mxu0 %v205_v2 }
   0x8   :  { %195 = vmatprep.subr.bf16.mxu0 %v206_v3  ;;  %v29_v7 = vld [vmem:[#allocation2 + $0x10] sm:$0xff]  ;;  %v27_v8 = vld [vmem:[#allocation2] sm:$0xff] }
   0x9   :  { %v30_v10 = vld [vmem:[#allocation2 + $0x18] sm:$0xff]  ;;  %v28_v13 = vld [vmem:[#allocation2 + $0x8] sm:$0xff] }
   0xb   :  { %196 = vmatpush3.bf16.msra.mxu0 %v206_v3 }
   0xc   :  { %197 = vmatprep.subr.bf16.mxu0 %v207_v5 }
   0xf   :  { %198 = vmatpush3.bf16.msra.mxu0 %v207_v5 }
  0x12   :  { %200 = vmatmul.mubr.msk.bf16.vlgmr.msra.gmra.mrb[0].mxu0 %vm77_vm1, %v209_v6 }
  0xe5   :  { %v201_v9 = vpop.f32.mrb[0].mxu0 }
  0xe6   :  { %v135_v11 = vadd.f32 %v201_v9, %v29_v7  ;;  %v118_v12 = vpop.f32.mrb[1].mxu0 }
  0xe7   :  { %v133_v14 = vadd.f32 %v118_v12, %v27_v8  ;;  %v202_v15 = vpop.f32.mrb[2].mxu0 }
  0xe8   :  { %140 = vst.msk [vmem:[#allocation2 + $0x10] sm:$0xff] %vm22_vm0, %v135_v11  ;;  %v136_v16 = vadd.f32 %v202_v15, %v30_v10  ;;  %v121_v17 = vpop.f32.mrb[3].mxu0 }
  0xe9   :  { %138 = vst.msk [vmem:[#allocation2] sm:$0xff] %vm22_vm0, %v133_v14  ;;  %v134_v18 = vadd.f32 %v121_v17, %v28_v13 }
  0xea   :  { %141 = vst.msk [vmem:[#allocation2 + $0x18] sm:$0xff] %vm22_vm0, %v136_v16 }
  0xeb   :  { %139 = vst.msk [vmem:[#allocation2 + $0x8] sm:$0xff] %vm22_vm0, %v134_v18 }
  0xef   :  { %v147_v20 = vld [vmem:[#allocation2 + $0x10] sm:$0xff] }
  0xf0   :  { %v158_v22 = vadd.f32 %v184_v19, %v147_v20  ;;  %v145_v23 = vld [vmem:[#allocation2] sm:$0xff] }
  0xf1   :  { %v156_v25 = vadd.f32 %v184_v19, %v145_v23  ;;  %v148_v26 = vld [vmem:[#allocation2 + $0x18] sm:$0xff] }
  0xf2   :  { %v166_v28 = vadd.f32 %v162_v21, %v158_v22  ;;  %v159_v29 = vadd.f32 %v184_v19, %v148_v26  ;;  %v146_v30 = vld [vmem:[#allocation2 + $0x8] sm:$0xff] }
  0xf3   :  { %v164_v32 = vadd.f32 %v160_v24, %v156_v25  ;;  %v157_v33 = vadd.f32 %v184_v19, %v146_v30 }
  0xf4   :  { %170 = vst.msk [vmem:[%s297_s4 + $0x10] sm:$0xff] %vm22_vm0, %v166_v28  ;;  %v167_v34 = vadd.f32 %v163_v27, %v159_v29 }
  0xf5   :  { %168 = vst.msk [vmem:[%s297_s4] sm:$0xff] %vm22_vm0, %v164_v32  ;;  %v165_v35 = vadd.f32 %v161_v31, %v157_v33 }
  0xf6   :  { %171 = vst.msk [vmem:[%s297_s4 + $0x18] sm:$0xff] %vm22_vm0, %v167_v34 }
  0xf7   :  { %169 = vst.msk [vmem:[%s297_s4 + $0x8] sm:$0xff] %vm22_vm0, %v165_v35 }

// kernel: _lambda_.31
= control target key start
LH: loop header
LB: loop body
LE: loop exit
PB: predicated region body
PF: predicated region fallthrough
CT: control target
= control target key end

     0   :  { %7 = vsyncpa [#allocation3], 0  ;;  %s568_s0 = inlined_call_operand.vmem [shape: f32[4,16], index: 0, kind: input, shape index: {}]   ;;  %s569_s1 = inlined_call_operand.vmem [shape: f32[2,16,32], index: 1, kind: input, shape index: {}]   ;;  %s570_s2 = inlined_call_operand.hbm [shape: f32[2,4,32], index: 2, kind: output, shape index: {}]  }
   0x1   :  { %9 = vsyncpa [#allocation3 + $0x1], 0  ;;  %s463_s9 = smov 0   ;;  %s465_s10 = smov 0  }
   0x2   :  { %s467_s11 = smov 0   ;;  %s469_s12 = smov 0  }
   0x3 LB: > { %s484_s13 = sadd.s32 4294967295, %s442_s12   ;;  %s308_s14 = sadd.s32 4294967294, %s442_s12   ;;  %s442_s12 = sphi %s469_s12, %s576_s12   ;;  %s438_s11 = sphi %s467_s11, %s575_s11   ;;  %s434_s10 = sphi %s465_s10, %s574_s10   ;;  %s430_s9 = sphi %s463_s9, %s573_s9  }
   0x4   : > { %s488_s15 = sadd.s32 1, %s442_s12   ;;  %s69_s16 = sadd.s32 1, %s438_s11 }
   0x5   : > { %s66_s17 = ssub.s32 %s442_s12, %s488_s15  ;;  %p79_p0 = scmp.ne.s32.totalorder %s438_s11, %s434_s10 }
   0x6   : > { %p67_p1 = scmp.eq.s32.totalorder %s66_s17, 0  ;;  %p80_p2 = scmp.eq.s32.totalorder %s484_s13, 1 }
   0x7   : > { %p85_p3 = scmp.ne.s32.totalorder %s434_s10, %s430_s9  ;;  %p86_p4 = scmp.eq.s32.totalorder %s308_s14, 1 }
   0x8   : > { %s499_s18 = scalar_select %p67_p1, %s438_s11, %s69_s16  }
   0x9   : > { %p501_p5 = por %p80_p2, %p79_p0  ;;  %p505_p6 = por %p86_p4, %p85_p3 }
   0xa   : > { %p311_p7 = scmp.ge.s32.totalorder %s442_s12, 1  ;;  %p115_p8 = scmp.lt.s32.totalorder %s442_s12, 3 }
   0xc   : > { %p116_p9 = pnand %p311_p7, %p115_p8 }
   0xd   : > { %p137_p10 = scmp.lt.s32.totalorder (!%p116_p9), %s484_s13, 1  ;;  %v444_v0 = vmov (!%p116_p9), 0.0|0.0   ;;  %vm445_vm0 = vmmov (!%p116_p9), 0   ;;  %v446_v1 = vmov (!%p116_p9), 0.0   ;;  %v142_v5 = vld [vmem:[%s568_s0] sm:$0xf] (!%p116_p9) }
   0xe   : > { %119 = sbr.rel (%p116_p9) target bundleno = 432 (0x1b0), region = 28  ;;  %331 = vmatprep.subr.bf16.mxu0 (!%p116_p9), %v444_v0  ;;  %328 = vmatprep.mubr.msk.f32.mxu0 (!%p116_p9), %vm445_vm0, %v446_v1  ;;  %vm145_vm1 = vcmask (!%p116_p9), 130048   ;;  %vm220_vm2 = vcmask (!%p116_p9), 257024   ;;  %s134_s28 = sand.u32 (!%p116_p9), 1, %s434_s10  }
   0xf   : > { %s312_s29 = sshll.u32 (!%p116_p9), %s134_s28, 2  ;;  %s317_s30 = sshll.u32 (!%p116_p9), %s484_s13, 6 }
  0x10   : > { %s136_s3 = scalar_lea.vmem (!%p116_p9), [#allocation2], %s312_s29  ;;  %s525_s7 = scalar_lea.hbm (!%p116_p9), %s570_s2, %s317_s30 }
  0x11   : > { %s249_s4 = sshll.u32 (!%p116_p9), %s136_s3, 4  ;;  %s236_s8 = scalar_lea.sflag (!%p116_p9), [#allocation3], %s134_s28  ;;  %s527_s4 = int_to_ptr.vmem [resolvable:$true] %s249_s4 }
  0x12   : > { %s380_s14 = scalar_lea.vmem (!%p116_p9), %s527_s4, 64 }
  0x13   : > { %p381_p11 = scmp.ne.s32.totalorder (!%p116_p9), %s527_s4, %s380_s14 }
  0x15   : > { %s138_s21 = scalar_select %p137_p10, %s484_s13, 1 }
  0x16   : > { %p382_p12 = pnand %p381_p11, %p501_p5  ;;  %s447_s13 = smov [#allocation2]  }
  0x17   : > { %s320_s22 = sshll.u32 %s138_s21, 4  ;;  %s384_s16 = sshll.u32 %s447_s13, 4  ;;  %s385_s16 = int_to_ptr.vmem [resolvable:$false] %s384_s16 }
  0x18   : > { %s141_s25 = scalar_lea.vmem %s569_s1, %s320_s22  ;;  %p383_p13 = pneg %p382_p12 }
  0x19   : > { %v143_v2 = vld [vmem:[%s141_s25] sm:$0xff]  ;;  %v144_v3 = vld [vmem:[%s141_s25 + $0x8] sm:$0xff]  ;;  %s386_s17 = scalar_lea.vmem %s385_s16, 128  ;;  %p387_p0 = scmp.lt.s32.totalorder %s527_s4, %s385_s16 }
  0x1a   : > { %v332_v4 = vpack.c.bf16 %v144_v3, %v143_v2  ;;  %p388_p1 = scmp.lt.s32.totalorder %s386_s17, %s380_s14 }
  0x1c   : > { %333 = vmatpush3.bf16.msra.mxu0 %v332_v4  ;;  %p389_p2 = por %p388_p1, %p387_p0 }
  0x1e   : > { %p390_p3 = pnand %p389_p2, %p383_p13 }
  0x1f   : > { %329 = vmatmul.mubr.msk.f32.vlgmr.msra.gmra.mrb[0].mxu0 %vm145_vm1, %v142_v5 }
  0xf2   : > { %v215_v6 = vpop.f32.mrb[0].mxu0 }
  0xf3   : > { %v330_v7 = vpop.f32.mrb[1].mxu0  ;;  %v219_v8 = vmul.f32 %v215_v6, %v215_v6 }
  0xf5   : > { %v221_v9 = vsel %vm220_vm2, %v219_v8, 0.0 }
  0xf6   : > { %222 = vadd.xlane.f32.xlu0 %v221_v9 }
 0x183   : > { %v223_v10 = vpop.xlane.xlu0 %222 }
 0x184   : > { %376 = vrsqrt.f32 %v223_v10  ;;  %vm226_vm3 = vcmp.eq.f32.partialorder %v223_v10, inf  ;;  %v229_v13 = vand.u32 2147483648, %v223_v10  ;;  %vm228_vm4 = vcmp.eq.f32.partialorder %v223_v10, 0.0 }
 0x18e   : > { %v377_v11 = vpop.eup %376 }
 0x18f   : > { %v225_v12 = vmul.f32 %v377_v11, %v223_v10 }
 0x191   : > { %v227_v14 = vsel %vm226_vm3, %v223_v10, %v225_v12 }
 0x192   : > { %v230_v15 = vsel %vm228_vm4, %v229_v13, %v227_v14 }
 0x193   : > { %v231_v16 = vmax.f32 %v230_v15, 1e-12 }
 0x195   : > { %378 = vrcp.f32 %v231_v16 }
 0x19f   : > { %v379_v17 = vpop.eup %378 }
 0x1a0   : > { %v233_v18 = vmul.f32 %v379_v17, %v215_v6 }
 0x1a2   : > { %234 = vst.msk [vmem:[%s136_s3] sm:$0xf] %vm220_vm2, %v233_v18 }
 0x1a3   : > { %393 = shalt.err (!%p390_p3)
}
 0x1a4   : > { %s394_s21 = scalar_lea.hbm %s525_s7, 64  ;;  %s398_s24 = scalar_lea.hbm %s570_s2, 128 }
 0x1a5   : > { %p395_p4 = scmp.ne.s32.totalorder %s525_s7, %s394_s21  ;;  %p399_p9 = scmp.lt.u32.totalorder %s525_s7, %s570_s2 }
 0x1a6   : > { %p400_p10 = scmp.lt.u32.totalorder %s398_s24, %s394_s21  ;;  %p402_p12 = scmp.lt.u32.totalorder %s394_s21, %s525_s7 }
 0x1a7   : > { %p396_p7 = pnand %p395_p4, %p501_p5 }
 0x1a8   : > { %p401_p11 = por %p400_p10, %p399_p9 }
 0x1a9   : > { %p397_p8 = pneg %p396_p7 }
 0x1aa   : > { %p403_p13 = por %p402_p12, %p401_p11 }
 0x1ac   : > { %p404_p0 = pnand %p403_p13, %p397_p8 }
 0x1ae   : > { %407 = shalt.err (!%p404_p0)
}
 0x1af   : > { %334 = dma.vmem_to_hbm [thread:$0]  (%p501_p5), %s527_s4, 64, %s525_s7, %s236_s8  }
 0x1b0 PF: > { %p340_p1 = scmp.ge.s32.totalorder %s442_s12, 2  ;;  %s261_s27 = sand.u32 1, %s430_s9  }
 0x1b1   : > { %s262_s28 = scalar_lea.sflag [#allocation3], %s261_s27 }
 0x1b2   : > { %p337_p2 = pnand %p340_p1, %p505_p6 }
 0x1b4   : > { %425 = dma.done.wait (!%p337_p2), %s262_s28, 64  }
 0x1b5   : > { %427 = vsyncadd (!%p337_p2), %s262_s28, 4294967232  ;;  %p12_p3 = scmp.ge.s32.totalorder %s488_s15, 4   ;;  %s573_s9 = smov %s434_s10 }
 0x1b6   : > { %s574_s10 = smov %s438_s11  ;;  %s575_s11 = smov %s499_s18 }
 0x1b7   : > { %s576_s12 = smov %s488_s15  ;;  %14 = sbr.rel (!%p12_p3) target bundleno = 3 (0x3), region = 63 }
 0x1be   :  { %267 = vsyncpa [#allocation3], 1 }
 0x1bf   :  { %269 = vsyncpa [#allocation3 + $0x1], 1 }

</bundles_post_ra>
